<compile_context>
chip_gen: v7x
topology: tpu7x:2x2x1
jax: 0.10.0
libtpu: 0.0.40
codegen_flags: <defaults>
</compile_context>

<pallas_src>
import functools

import jax
import jax.numpy as jnp
from jax.experimental import pallas as pl
from jax.experimental.pallas import tpu as pltpu

# ----------------------- small-shape configuration -----------------------
B = 2                 # batch
LATENT = 32           # latent dim                    (torch: 256)
FC1, FC2, FC3 = 64, 128, 256                         # (torch: 512/1024/2048)
C0 = 64               # channels after fc4 reshape    (torch: 512)
FACTOR = 4            # spatial size after fc4        (torch: 32)
UP_CH = [C0, 32, 16, 8]                              # (torch: 512/256/128/64)
SH_DEGREE = 3
COLOR = (SH_DEGREE + 1) ** 2                         # 16
OUT_CH = COLOR * 3                                   # 48
GAUSSIANS = FACTOR * 8                               # 32 (final spatial size)

_OFFSETS = ((0, 0), (0, 1), (1, 0), (1, 1))          # (dr, dc), offset-major


def _round_up(x, m):
    return (x + m - 1) // m * m


# ----------------------------- Pallas kernels -----------------------------
def _mlp3_kernel(x_ref, w1, b1, w2, b2, w3, b3, o_ref):
    """fc1..fc3 fused: bf16 matmuls, f32 accumulate + bias + ReLU."""
    h = x_ref[...].astype(jnp.bfloat16)
    for w_ref, b_ref in ((w1, b1), (w2, b2), (w3, b3)):
        y = jnp.dot(h, w_ref[...], preferred_element_type=jnp.float32)
        h = jnp.maximum(y + b_ref[...], 0.0).astype(jnp.bfloat16)
    o_ref[...] = h


def _fc4_kernel(x_ref, w_ref, b_ref, o_ref):
    """fc4 N-tile: x (B,K) bf16 @ streamed weight column block (K,TN)."""
    y = jnp.dot(x_ref[...], w_ref[...], preferred_element_type=jnp.float32)
    o_ref[...] = jnp.maximum(y + b_ref[...], 0.0).astype(o_ref.dtype)


def _upconv_kernel(x_ref, w_ref, b_ref, o_ref):
    """4-parity transposed conv as ONE K=4*Cin GEMM.

    x_ref: (1, TM, 4*Cin) bf16  K-folded, spatially flattened LHS tile
    w_ref: (4*Cin, n_pad) bf16  offset-major rows, phase-major cols
    b_ref: (1, n_pad)     f32   bias tiled per phase
    o_ref: (1, TM, n_pad) bf16  post-ReLU phase slab tile (lane-dense)
    """
    acc = jnp.dot(x_ref[0, :, :], w_ref[...], preferred_element_type=jnp.float32)
    acc = jnp.maximum(acc + b_ref[...], 0.0)
    o_ref[0, :, :] = acc.astype(o_ref.dtype)


def _outconv_kernel(x_ref, w_ref, b_ref, o_ref, *, TH, W, K3):
    """Final 3x3 conv: 3 accumulated GEMMs (K=3*Cin) from in-VMEM row shifts.

    x_ref: (1, H+2, W, 3*Cin) bf16  kx-folded, row-haloed input (per batch)
    w_ref: (3, 3*Cin, n_pad)  bf16  per-ky weight slabs, (kx,cin)-major rows
    b_ref: (1, n_pad)         f32
    o_ref: (1, TH*W, n_pad)   f32   row-tile of the flattened output
    """
    row0 = pl.multiple_of(pl.program_id(1) * TH, TH)
    n_pad = o_ref.shape[-1]
    acc = jnp.zeros((TH * W, n_pad), jnp.float32)
    for ky in range(3):
        patch = x_ref[0, pl.ds(row0 + ky, TH), :, :]          # (TH, W, 3*Cin)
        patch = patch.reshape(TH * W, K3)
        acc = acc + jnp.dot(patch, w_ref[ky, :, :],
                            preferred_element_type=jnp.float32)
    o_ref[0, :, :] = (acc + b_ref[...]).astype(o_ref.dtype)


# ----------------------------- layer wrappers ------------------------------
def mlp3_forward(x, p):
    args = [x, p["fc1_w"], p["fc1_b"], p["fc2_w"], p["fc2_b"],
            p["fc3_w"], p["fc3_b"]]
    Bb = x.shape[0]
    Dout = p["fc3_w"].shape[1]
    return pl.pallas_call(
        _mlp3_kernel,
        out_shape=jax.ShapeDtypeStruct((Bb, Dout), jnp.bfloat16),
        grid=(1,),
        in_specs=[pl.BlockSpec(a.shape, lambda i: (0, 0)) for a in args],
        out_specs=pl.BlockSpec((Bb, Dout), lambda i: (0, 0)),
    )(*args)


def fc4_forward(h, p, *, tn=256):
    """fc4 with grid over N: weight column blocks streamed (double-buffered)."""
    w, b = p["fc4_w"], p["fc4_b"]
    Bb, K = h.shape
    N = w.shape[1]
    tn = min(tn, N)
    assert N % tn == 0
    # TODO(synk): at torch scale (K=2048, N=524288) pick tn per-chip VMEM
    # (2048 on v7x / 4096-8192 on v5e/v6e with vmem_limit_bytes raised).
    return pl.pallas_call(
        _fc4_kernel,
        out_shape=jax.ShapeDtypeStruct((Bb, N), jnp.bfloat16),
        grid=(N // tn,),
        in_specs=[
            pl.BlockSpec((Bb, K), lambda j: (0, 0)),
            pl.BlockSpec((K, tn), lambda j: (0, j)),
            pl.BlockSpec((1, tn), lambda j: (0, j)),
        ],
        out_specs=pl.BlockSpec((Bb, tn), lambda j: (0, j)),
        compiler_params=pltpu.CompilerParams(dimension_semantics=("parallel",)),
    )(h, w, b)


def _build_upconv_weight(w_t, n_pad):
    """torch (Cin, Cout, 3, 3) -> (4*Cin, n_pad) bf16 slab.

    Row block o (input offset (dr,dc)), col block p=2*r+c (output parity);
    tap (ky, kx) = (r+1-2*dr, c+1-2*dc) when valid, else a zero block.
    """
    Cin, Cout = w_t.shape[0], w_t.shape[1]
    row_blocks = []
    for dr, dc in _OFFSETS:
        cols = []
        for r in (0, 1):
            for c in (0, 1):
                ky, kx = r + 1 - 2 * dr, c + 1 - 2 * dc
                if 0 <= ky <= 2 and 0 <= kx <= 2:
                    cols.append(w_t[:, :, ky, kx])
                else:
                    cols.append(jnp.zeros((Cin, Cout), w_t.dtype))
        row_blocks.append(jnp.concatenate(cols, axis=1))      # (Cin, 4*Cout)
    w = jnp.concatenate(row_blocks, axis=0)                   # (4*Cin, 4*Cout)
    w = jnp.pad(w, ((0, 0), (0, n_pad - 4 * Cout)))
    return w.astype(jnp.bfloat16)


def upconv_layer(x, w_slab, b_slab, cout):
    """ConvTranspose2d(Cin,Cout,3,stride=2,padding=1,output_padding=1) + ReLU,
    NHWC bf16, via the 4-parity decomposition folded into a single GEMM."""
    Bb, H, W, Cin = x.shape
    n_pad = w_slab.shape[1]
    n_out = 4 * cout
    M = H * W
    tm = M if M <= 128 else 128   # TODO(synk): raise to 256-512 at torch scale
    assert M % tm == 0

    # high-side halo (output_padding=1 / stride-2 boundary), then K-fold the
    # four (dr,dc) shifts channel-wise (offset-major) and flatten space.
    xp = jnp.pad(x, ((0, 0), (0, 1), (0, 1), (0, 0)))
    xcat = jnp.concatenate(
        [xp[:, dr:dr + H, dc:dc + W, :] for dr, dc in _OFFSETS], axis=-1)
    xcat = xcat.reshape(Bb, M, 4 * Cin)

    out = pl.pallas_call(
        _upconv_kernel,
        out_shape=jax.ShapeDtypeStruct((Bb, M, n_pad), jnp.bfloat16),
        grid=(Bb, M // tm),
        in_specs=[
            pl.BlockSpec((1, tm, 4 * Cin), lambda b_, t: (b_, t, 0)),
            pl.BlockSpec(w_slab.shape, lambda b_, t: (0, 0)),
            pl.BlockSpec(b_slab.shape, lambda b_, t: (0, 0)),
        ],
        out_specs=pl.BlockSpec((1, tm, n_pad), lambda b_, t: (b_, t, 0)),
        compiler_params=pltpu.CompilerParams(
            dimension_semantics=("parallel", "parallel")),
    )(xcat, w_slab, b_slab)

    # interleave the 4 parity phases: slab[b, m*W+n, (2r+c)*Cout+co] -> y[b,2m+r,2n+c,co]
    # TODO(synk): at torch scale, have the next layer consume the phase slab
    # directly (re-indexed weight slab) to avoid this HBM round trip.
    out = out[..., :n_out].reshape(Bb, H, W, 2, 2, cout)
    out = jnp.transpose(out, (0, 1, 3, 2, 4, 5)).reshape(Bb, 2 * H, 2 * W, cout)
    return out


def output_conv_layer(x, w_slab, b_slab):
    """Conv2d(Cin, 48, 3, stride=1, padding=1) (no activation), NHWC -> f32."""
    Bb, H, W, Cin = x.shape
    n_pad = w_slab.shape[-1]
    K3 = 3 * Cin
    TH = min(8, H)
    assert H % TH == 0

    xp = jnp.pad(x, ((0, 0), (1, 1), (1, 1), (0, 0)))
    # fold only the kx axis wrapper-side (3x, not 9x); rows keep their halo and
    # the kernel does the ky fold with in-VMEM row shifts.
    xcol = jnp.concatenate([xp[:, :, kx:kx + W, :] for kx in range(3)], axis=-1)

    kernel = functools.partial(_outconv_kernel, TH=TH, W=W, K3=K3)
    out = pl.pallas_call(
        kernel,
        out_shape=jax.ShapeDtypeStruct((Bb, H * W, n_pad), jnp.float32),
        grid=(Bb, H // TH),
        in_specs=[
            pl.BlockSpec((1, H + 2, W, K3), lambda b_, t: (b_, 0, 0, 0)),
            pl.BlockSpec(w_slab.shape, lambda b_, t: (0, 0, 0)),
            pl.BlockSpec(b_slab.shape, lambda b_, t: (0, 0)),
        ],
        out_specs=pl.BlockSpec((1, TH * W, n_pad), lambda b_, t: (b_, t, 0)),
        compiler_params=pltpu.CompilerParams(
            dimension_semantics=("parallel", "parallel")),
    )(xcol, w_slab, b_slab)
    # TODO(synk): on v5e, store bf16 here to halve the final-layer HBM write.
    return out.reshape(Bb, H, W, n_pad)[..., :OUT_CH]          # (B, H, W, 48) f32


# ------------------------------- parameters --------------------------------
def init_params(key):
    """Torch-layout f32 parameters (the reference semantics)."""
    keys = jax.random.split(key, 16)
    p = {}

    def lin(kw, kb, din, dout):
        w = jax.random.normal(kw, (din, dout), jnp.float32) / jnp.sqrt(din)
        b = 0.01 * jax.random.normal(kb, (1, dout), jnp.float32)
        return w, b

    p["fc1_w"], p["fc1_b"] = lin(keys[0], keys[1], LATENT, FC1)
    p["fc2_w"], p["fc2_b"] = lin(keys[2], keys[3], FC1, FC2)
    p["fc3_w"], p["fc3_b"] = lin(keys[4], keys[5], FC2, FC3)
    p["fc4_w"], p["fc4_b"] = lin(keys[6], keys[7], FC3, C0 * FACTOR * FACTOR)

    # ConvTranspose2d weights: torch layout (Cin, Cout, 3, 3)
    for i in range(3):
        cin, cout = UP_CH[i], UP_CH[i + 1]
        w = jax.random.normal(keys[8 + 2 * i], (cin, cout, 3, 3),
                              jnp.float32) / jnp.sqrt(9.0 * cin)
        b = 0.01 * jax.random.normal(keys[9 + 2 * i], (cout,), jnp.float32)
        p[f"up{i + 1}_w"], p[f"up{i + 1}_b"] = w, b

    # Conv2d output layer: torch layout (Cout, Cin, 3, 3)
    p["out_w"] = jax.random.normal(keys[14], (OUT_CH, UP_CH[3], 3, 3),
                                   jnp.float32) / jnp.sqrt(9.0 * UP_CH[3])
    p["out_b"] = 0.01 * jax.random.normal(keys[15], (OUT_CH,), jnp.float32)
    return p


def pack_params(p):
    """ONE-TIME (outside jit): cast/reshape parameters into kernel-ready slabs."""
    pk = {}
    for i in (1, 2, 3, 4):
        pk[f"fc{i}_w"] = p[f"fc{i}_w"].astype(jnp.bfloat16)
        pk[f"fc{i}_b"] = p[f"fc{i}_b"].astype(jnp.float32)
    for i in (1, 2, 3):
        w, b = p[f"up{i}_w"], p[f"up{i}_b"]
        cout = w.shape[1]
        n_pad = _round_up(4 * cout, 128)   # torch-scale 4*Cout is already 256k-aligned
        pk[f"up{i}_w"] = _build_upconv_weight(w, n_pad)
        bp = jnp.pad(jnp.tile(b, 4), (0, n_pad - 4 * cout))
        pk[f"up{i}_b"] = bp.reshape(1, n_pad).astype(jnp.float32)
    w, b = p["out_w"], p["out_b"]
    cout, cin = w.shape[0], w.shape[1]
    n_pad = _round_up(cout, 128)
    w2d = jnp.transpose(w, (2, 3, 1, 0)).reshape(9 * cin, cout)   # (ky,kx,ci) rows
    w2d = jnp.pad(w2d, ((0, 0), (0, n_pad - cout))).astype(jnp.bfloat16)
    pk["out_w"] = w2d.reshape(3, 3 * cin, n_pad)                  # per-ky slabs
    pk["out_b"] = jnp.pad(b, (0, n_pad - cout)).reshape(1, n_pad).astype(jnp.float32)
    return pk


# --------------------------------- forward ---------------------------------
def decoder_forward(latent_code, p):
    bsz = latent_code.shape[0]
    h = mlp3_forward(latent_code, p)                 # (B, FC3)      bf16
    x = fc4_forward(h, p)                            # (B, C0*F*F)   bf16

    # x.view(B, C0, factor, factor) (NCHW) -> NHWC for the conv kernels
    x = x.reshape(bsz, C0, FACTOR, FACTOR)
    x = jnp.transpose(x, (0, 2, 3, 1))

    x = upconv_layer(x, p["up1_w"], p["up1_b"], UP_CH[1])
    x = upconv_layer(x, p["up2_w"], p["up2_b"], UP_CH[2])
    x = upconv_layer(x, p["up3_w"], p["up3_b"], UP_CH[3])
    x = output_conv_layer(x, p["out_w"], p["out_b"])  # (B, G, G, 48) f32

    # back to NCHW, then the torch view/permute/reshape
    x = jnp.transpose(x, (0, 3, 1, 2))               # (B, 48, G, G)
    g = x.shape[-1]
    x = x.reshape(bsz, COLOR, 3, g * g)              # view
    x = jnp.transpose(x, (0, 1, 3, 2))               # permute(0,1,3,2)
    return x.reshape(-1, COLOR, 3)                   # reshape(-1, color, 3)


# ----------------------------------- main -----------------------------------
if __name__ == "__main__":
    key = jax.random.PRNGKey(0)
    k_params, k_x = jax.random.split(key)
    params = init_params(k_params)
    packed = pack_params(params)                     # one-time, outside jit
    latent_code = jax.random.normal(k_x, (B, LATENT), jnp.float32)

    out = jax.jit(decoder_forward)(latent_code, packed)
    out = jax.block_until_ready(out)

    assert out.shape == (B * GAUSSIANS * GAUSSIANS, COLOR, 3), out.shape
    assert out.dtype == jnp.float32
    print("KERNEL_OK")
</pallas_src>

<mosaic_0001>
module attributes {stable_mosaic.version = 11 : i64} {
  func.func @_fc4_kernel(%arg0: i32, %arg1: memref<2x256xbf16, #tpu.memory_space<vmem>>, %arg2: memref<256x256xbf16, #tpu.memory_space<vmem>>, %arg3: memref<1x256xf32, #tpu.memory_space<vmem>>, %arg4: memref<2x256xbf16, #tpu.memory_space<vmem>>) attributes {dimension_semantics = [#tpu.dimension_semantics<parallel>], iteration_bounds = array<i64: 4>, scalar_prefetch = 0 : i64, scratch_operands = 0 : i64, tpu.core_type = #tpu.core_type<tc>, window_params = [{pipeline_mode = #tpu.pipeline_mode<synchronous>, transform_indices = @transform_0, window_bounds = array<i64: 2, 256>}, {transform_indices = @transform_1, window_bounds = array<i64: 256, 256>}, {transform_indices = @transform_2, window_bounds = array<i64: 1, 256>}, {transform_indices = @transform_3, window_bounds = array<i64: 2, 256>}]} {
    %c0 = arith.constant 0 : index
    %c0_0 = arith.constant 0 : index
    %0 = vector.load %arg1[%c0, %c0_0] : memref<2x256xbf16, #tpu.memory_space<vmem>>, vector<2x256xbf16>
    %c0_1 = arith.constant 0 : index
    %c0_2 = arith.constant 0 : index
    %1 = vector.load %arg2[%c0_1, %c0_2] : memref<256x256xbf16, #tpu.memory_space<vmem>>, vector<256x256xbf16>
    %cst = arith.constant dense<0.000000e+00> : vector<2x256xf32>
    %2 = tpu.matmul %0, %1, %cst {dimension_numbers = #tpu.dot_dimension_numbers<[1], [0], [0], [1], [0, 0, 1, 1], [], []>} : vector<2x256xbf16>, vector<256x256xbf16>, vector<2x256xf32> -> vector<2x256xf32>
    %c0_3 = arith.constant 0 : index
    %c0_4 = arith.constant 0 : index
    %3 = vector.load %arg3[%c0_3, %c0_4] : memref<1x256xf32, #tpu.memory_space<vmem>>, vector<1x256xf32>
    %4 = vector.broadcast %3 : vector<1x256xf32> to vector<2x256xf32>
    %5 = arith.addf %2, %4 : vector<2x256xf32>
    %cst_5 = arith.constant 0.000000e+00 : f32
    %6 = vector.broadcast %cst_5 : f32 to vector<2x256xf32>
    %7 = arith.maximumf %5, %6 : vector<2x256xf32>
    %8 = arith.truncf %7 : vector<2x256xf32> to vector<2x256xbf16>
    %c0_6 = arith.constant 0 : index
    %c0_7 = arith.constant 0 : index
    %9 = vector.load %arg4[%c0_6, %c0_7] : memref<2x256xbf16, #tpu.memory_space<vmem>>, vector<2x256xbf16>
    tpu.vector_store %arg4[%c0_6, %c0_7], %8 {strides = array<i32>} : memref<2x256xbf16, #tpu.memory_space<vmem>>, vector<2x256xbf16>,
    return
  }
  func.func @transform_0(%arg0: i32) -> (i32, i32) {
    %c0_i32 = arith.constant 0 : i32
    %c0_i32_0 = arith.constant 0 : i32
    %c0_i32_1 = arith.constant 0 : i32
    return %c0_i32, %c0_i32_0 : i32, i32
  }
  func.func @transform_1(%arg0: i32) -> (i32, i32) {
    %c0_i32 = arith.constant 0 : i32
    %c0_i32_0 = arith.constant 0 : i32
    return %c0_i32, %arg0 : i32, i32
  }
  func.func @transform_2(%arg0: i32) -> (i32, i32) {
    %c0_i32 = arith.constant 0 : i32
    %c0_i32_0 = arith.constant 0 : i32
    return %c0_i32, %arg0 : i32, i32
  }
  func.func @transform_3(%arg0: i32) -> (i32, i32) {
    %c0_i32 = arith.constant 0 : i32
    %c0_i32_0 = arith.constant 0 : i32
    return %c0_i32, %arg0 : i32, i32
  }
}

module attributes {stable_mosaic.version = 11 : i64} {
  func.func @_mlp3_kernel(%arg0: i32, %arg1: memref<2x32xf32, #tpu.memory_space<vmem>>, %arg2: memref<32x64xbf16, #tpu.memory_space<vmem>>, %arg3: memref<1x64xf32, #tpu.memory_space<vmem>>, %arg4: memref<64x128xbf16, #tpu.memory_space<vmem>>, %arg5: memref<1x128xf32, #tpu.memory_space<vmem>>, %arg6: memref<128x256xbf16, #tpu.memory_space<vmem>>, %arg7: memref<1x256xf32, #tpu.memory_space<vmem>>, %arg8: memref<2x256xbf16, #tpu.memory_space<vmem>>) attributes {dimension_semantics = [#tpu.dimension_semantics<arbitrary>], iteration_bounds = array<i64: 1>, scalar_prefetch = 0 : i64, scratch_operands = 0 : i64, tpu.core_type = #tpu.core_type<tc>, window_params = [{pipeline_mode = #tpu.pipeline_mode<synchronous>, transform_indices = @transform_0, window_bounds = array<i64: 2, 32>}, {pipeline_mode = #tpu.pipeline_mode<synchronous>, transform_indices = @transform_1, window_bounds = array<i64: 32, 64>}, {pipeline_mode = #tpu.pipeline_mode<synchronous>, transform_indices = @transform_2, window_bounds = array<i64: 1, 64>}, {pipeline_mode = #tpu.pipeline_mode<synchronous>, transform_indices = @transform_3, window_bounds = array<i64: 64, 128>}, {pipeline_mode = #tpu.pipeline_mode<synchronous>, transform_indices = @transform_4, window_bounds = array<i64: 1, 128>}, {pipeline_mode = #tpu.pipeline_mode<synchronous>, transform_indices = @transform_5, window_bounds = array<i64: 128, 256>}, {pipeline_mode = #tpu.pipeline_mode<synchronous>, transform_indices = @transform_6, window_bounds = array<i64: 1, 256>}, {pipeline_mode = #tpu.pipeline_mode<synchronous>, transform_indices = @transform_7, window_bounds = array<i64: 2, 256>}]} {
    %c0 = arith.constant 0 : index
    %c0_0 = arith.constant 0 : index
    %0 = vector.load %arg1[%c0, %c0_0] : memref<2x32xf32, #tpu.memory_space<vmem>>, vector<2x32xf32>
    %1 = arith.truncf %0 : vector<2x32xf32> to vector<2x32xbf16>
    %c0_1 = arith.constant 0 : index
    %c0_2 = arith.constant 0 : index
    %2 = vector.load %arg2[%c0_1, %c0_2] : memref<32x64xbf16, #tpu.memory_space<vmem>>, vector<32x64xbf16>
    %cst = arith.constant dense<0.000000e+00> : vector<2x64xf32>
    %3 = tpu.matmul %1, %2, %cst {dimension_numbers = #tpu.dot_dimension_numbers<[1], [0], [0], [1], [0, 0, 1, 1], [], []>} : vector<2x32xbf16>, vector<32x64xbf16>, vector<2x64xf32> -> vector<2x64xf32>
    %c0_3 = arith.constant 0 : index
    %c0_4 = arith.constant 0 : index
    %4 = vector.load %arg3[%c0_3, %c0_4] : memref<1x64xf32, #tpu.memory_space<vmem>>, vector<1x64xf32>
    %5 = vector.broadcast %4 : vector<1x64xf32> to vector<2x64xf32>
    %6 = arith.addf %3, %5 : vector<2x64xf32>
    %cst_5 = arith.constant 0.000000e+00 : f32
    %7 = vector.broadcast %cst_5 : f32 to vector<2x64xf32>
    %8 = arith.maximumf %6, %7 : vector<2x64xf32>
    %9 = arith.truncf %8 : vector<2x64xf32> to vector<2x64xbf16>
    %c0_6 = arith.constant 0 : index
    %c0_7 = arith.constant 0 : index
    %10 = vector.load %arg4[%c0_6, %c0_7] : memref<64x128xbf16, #tpu.memory_space<vmem>>, vector<64x128xbf16>
    %cst_8 = arith.constant dense<0.000000e+00> : vector<2x128xf32>
    %11 = tpu.matmul %9, %10, %cst_8 {dimension_numbers = #tpu.dot_dimension_numbers<[1], [0], [0], [1], [0, 0, 1, 1], [], []>} : vector<2x64xbf16>, vector<64x128xbf16>, vector<2x128xf32> -> vector<2x128xf32>
    %c0_9 = arith.constant 0 : index
    %c0_10 = arith.constant 0 : index
    %12 = vector.load %arg5[%c0_9, %c0_10] : memref<1x128xf32, #tpu.memory_space<vmem>>, vector<1x128xf32>
    %13 = vector.broadcast %12 : vector<1x128xf32> to vector<2x128xf32>
    %14 = arith.addf %11, %13 : vector<2x128xf32>
    %cst_11 = arith.constant 0.000000e+00 : f32
    %15 = vector.broadcast %cst_11 : f32 to vector<2x128xf32>
    %16 = arith.maximumf %14, %15 : vector<2x128xf32>
    %17 = arith.truncf %16 : vector<2x128xf32> to vector<2x128xbf16>
    %c0_12 = arith.constant 0 : index
    %c0_13 = arith.constant 0 : index
    %18 = vector.load %arg6[%c0_12, %c0_13] : memref<128x256xbf16, #tpu.memory_space<vmem>>, vector<128x256xbf16>
    %cst_14 = arith.constant dense<0.000000e+00> : vector<2x256xf32>
    %19 = tpu.matmul %17, %18, %cst_14 {dimension_numbers = #tpu.dot_dimension_numbers<[1], [0], [0], [1], [0, 0, 1, 1], [], []>} : vector<2x128xbf16>, vector<128x256xbf16>, vector<2x256xf32> -> vector<2x256xf32>
    %c0_15 = arith.constant 0 : index
    %c0_16 = arith.constant 0 : index
    %20 = vector.load %arg7[%c0_15, %c0_16] : memref<1x256xf32, #tpu.memory_space<vmem>>, vector<1x256xf32>
    %21 = vector.broadcast %20 : vector<1x256xf32> to vector<2x256xf32>
    %22 = arith.addf %19, %21 : vector<2x256xf32>
    %cst_17 = arith.constant 0.000000e+00 : f32
    %23 = vector.broadcast %cst_17 : f32 to vector<2x256xf32>
    %24 = arith.maximumf %22, %23 : vector<2x256xf32>
    %25 = arith.truncf %24 : vector<2x256xf32> to vector<2x256xbf16>
    %c0_18 = arith.constant 0 : index
    %c0_19 = arith.constant 0 : index
    %26 = vector.load %arg8[%c0_18, %c0_19] : memref<2x256xbf16, #tpu.memory_space<vmem>>, vector<2x256xbf16>
    tpu.vector_store %arg8[%c0_18, %c0_19], %25 {strides = array<i32>} : memref<2x256xbf16, #tpu.memory_space<vmem>>, vector<2x256xbf16>,
    return
  }
  func.func @transform_0(%arg0: i32) -> (i32, i32) {
    %c0_i32 = arith.constant 0 : i32
    %c0_i32_0 = arith.constant 0 : i32
    %c0_i32_1 = arith.constant 0 : i32
    return %c0_i32, %c0_i32_0 : i32, i32
  }
  func.func @transform_1(%arg0: i32) -> (i32, i32) {
    %c0_i32 = arith.constant 0 : i32
    %c0_i32_0 = arith.constant 0 : i32
    %c0_i32_1 = arith.constant 0 : i32
    return %c0_i32, %c0_i32_0 : i32, i32
  }
  func.func @transform_2(%arg0: i32) -> (i32, i32) {
    %c0_i32 = arith.constant 0 : i32
    %c0_i32_0 = arith.constant 0 : i32
    %c0_i32_1 = arith.constant 0 : i32
    return %c0_i32, %c0_i32_0 : i32, i32
  }
  func.func @transform_3(%arg0: i32) -> (i32, i32) {
    %c0_i32 = arith.constant 0 : i32
    %c0_i32_0 = arith.constant 0 : i32
    %c0_i32_1 = arith.constant 0 : i32
    return %c0_i32, %c0_i32_0 : i32, i32
  }
  func.func @transform_4(%arg0: i32) -> (i32, i32) {
    %c0_i32 = arith.constant 0 : i32
    %c0_i32_0 = arith.constant 0 : i32
    %c0_i32_1 = arith.constant 0 : i32
    return %c0_i32, %c0_i32_0 : i32, i32
  }
  func.func @transform_5(%arg0: i32) -> (i32, i32) {
    %c0_i32 = arith.constant 0 : i32
    %c0_i32_0 = arith.constant 0 : i32
    %c0_i32_1 = arith.constant 0 : i32
    return %c0_i32, %c0_i32_0 : i32, i32
  }
  func.func @transform_6(%arg0: i32) -> (i32, i32) {
    %c0_i32 = arith.constant 0 : i32
    %c0_i32_0 = arith.constant 0 : i32
    %c0_i32_1 = arith.constant 0 : i32
    return %c0_i32, %c0_i32_0 : i32, i32
  }
  func.func @transform_7(%arg0: i32) -> (i32, i32) {
    %c0_i32 = arith.constant 0 : i32
    %c0_i32_0 = arith.constant 0 : i32
    %c0_i32_1 = arith.constant 0 : i32
    return %c0_i32, %c0_i32_0 : i32, i32
  }
}

module attributes {stable_mosaic.version = 11 : i64} {
  func.func @_upconv_kernel(%arg0: i32, %arg1: i32, %arg2: memref<1x16x256xbf16, #tpu.memory_space<vmem>>, %arg3: memref<256x128xbf16, #tpu.memory_space<vmem>>, %arg4: memref<1x128xf32, #tpu.memory_space<vmem>>, %arg5: memref<1x16x128xbf16, #tpu.memory_space<vmem>>) attributes {dimension_semantics = [#tpu.dimension_semantics<parallel>, #tpu.dimension_semantics<parallel>], iteration_bounds = array<i64: 2, 1>, scalar_prefetch = 0 : i64, scratch_operands = 0 : i64, tpu.core_type = #tpu.core_type<tc>, window_params = [{transform_indices = @transform_0, window_bounds = array<i64: 1, 16, 256>}, {pipeline_mode = #tpu.pipeline_mode<synchronous>, transform_indices = @transform_1, window_bounds = array<i64: 256, 128>}, {pipeline_mode = #tpu.pipeline_mode<synchronous>, transform_indices = @transform_2, window_bounds = array<i64: 1, 128>}, {transform_indices = @transform_3, window_bounds = array<i64: 1, 16, 128>}]} {
    %c0 = arith.constant 0 : index
    %c0_0 = arith.constant 0 : index
    %c0_1 = arith.constant 0 : index
    %0 = vector.load %arg2[%c0, %c0_0, %c0_1] : memref<1x16x256xbf16, #tpu.memory_space<vmem>>, vector<1x16x256xbf16>
    %1 = vector.shape_cast %0 : vector<1x16x256xbf16> to vector<16x256xbf16>
    %c0_2 = arith.constant 0 : index
    %c0_3 = arith.constant 0 : index
    %2 = vector.load %arg3[%c0_2, %c0_3] : memref<256x128xbf16, #tpu.memory_space<vmem>>, vector<256x128xbf16>
    %cst = arith.constant dense<0.000000e+00> : vector<16x128xf32>
    %3 = tpu.matmul %1, %2, %cst {dimension_numbers = #tpu.dot_dimension_numbers<[1], [0], [0], [1], [0, 0, 1, 1], [], []>} : vector<16x256xbf16>, vector<256x128xbf16>, vector<16x128xf32> -> vector<16x128xf32>
    %c0_4 = arith.constant 0 : index
    %c0_5 = arith.constant 0 : index
    %4 = vector.load %arg4[%c0_4, %c0_5] : memref<1x128xf32, #tpu.memory_space<vmem>>, vector<1x128xf32>
    %5 = vector.broadcast %4 : vector<1x128xf32> to vector<16x128xf32>
    %6 = arith.addf %3, %5 : vector<16x128xf32>
    %cst_6 = arith.constant 0.000000e+00 : f32
    %7 = vector.broadcast %cst_6 : f32 to vector<16x128xf32>
    %8 = arith.maximumf %6, %7 : vector<16x128xf32>
    %9 = arith.truncf %8 : vector<16x128xf32> to vector<16x128xbf16>
    %c0_7 = arith.constant 0 : index
    %c0_8 = arith.constant 0 : index
    %c0_9 = arith.constant 0 : index
    %10 = vector.load %arg5[%c0_7, %c0_8, %c0_9] : memref<1x16x128xbf16, #tpu.memory_space<vmem>>, vector<1x16x128xbf16>
    %11 = vector.shape_cast %10 : vector<1x16x128xbf16> to vector<16x128xbf16>
    %12 = vector.shape_cast %9 : vector<16x128xbf16> to vector<1x16x128xbf16>
    tpu.vector_store %arg5[%c0_7, %c0_8, %c0_9], %12 {strides = array<i32>} : memref<1x16x128xbf16, #tpu.memory_space<vmem>>, vector<1x16x128xbf16>,
    return
  }
  func.func @transform_0(%arg0: i32, %arg1: i32) -> (i32, i32, i32) {
    %c0_i32 = arith.constant 0 : i32
    %c0_i32_0 = arith.constant 0 : i32
    return %arg0, %arg1, %c0_i32 : i32, i32, i32
  }
  func.func @transform_1(%arg0: i32, %arg1: i32) -> (i32, i32) {
    %c0_i32 = arith.constant 0 : i32
    %c0_i32_0 = arith.constant 0 : i32
    %c0_i32_1 = arith.constant 0 : i32
    return %c0_i32, %c0_i32_0 : i32, i32
  }
  func.func @transform_2(%arg0: i32, %arg1: i32) -> (i32, i32) {
    %c0_i32 = arith.constant 0 : i32
    %c0_i32_0 = arith.constant 0 : i32
    %c0_i32_1 = arith.constant 0 : i32
    return %c0_i32, %c0_i32_0 : i32, i32
  }
  func.func @transform_3(%arg0: i32, %arg1: i32) -> (i32, i32, i32) {
    %c0_i32 = arith.constant 0 : i32
    %c0_i32_0 = arith.constant 0 : i32
    return %arg0, %arg1, %c0_i32 : i32, i32, i32
  }
}

module attributes {stable_mosaic.version = 11 : i64} {
  func.func @_upconv_kernel(%arg0: i32, %arg1: i32, %arg2: memref<1x64x128xbf16, #tpu.memory_space<vmem>>, %arg3: memref<128x128xbf16, #tpu.memory_space<vmem>>, %arg4: memref<1x128xf32, #tpu.memory_space<vmem>>, %arg5: memref<1x64x128xbf16, #tpu.memory_space<vmem>>) attributes {dimension_semantics = [#tpu.dimension_semantics<parallel>, #tpu.dimension_semantics<parallel>], iteration_bounds = array<i64: 2, 1>, scalar_prefetch = 0 : i64, scratch_operands = 0 : i64, tpu.core_type = #tpu.core_type<tc>, window_params = [{transform_indices = @transform_0, window_bounds = array<i64: 1, 64, 128>}, {pipeline_mode = #tpu.pipeline_mode<synchronous>, transform_indices = @transform_1, window_bounds = array<i64: 128, 128>}, {pipeline_mode = #tpu.pipeline_mode<synchronous>, transform_indices = @transform_2, window_bounds = array<i64: 1, 128>}, {transform_indices = @transform_3, window_bounds = array<i64: 1, 64, 128>}]} {
    %c0 = arith.constant 0 : index
    %c0_0 = arith.constant 0 : index
    %c0_1 = arith.constant 0 : index
    %0 = vector.load %arg2[%c0, %c0_0, %c0_1] : memref<1x64x128xbf16, #tpu.memory_space<vmem>>, vector<1x64x128xbf16>
    %1 = vector.shape_cast %0 : vector<1x64x128xbf16> to vector<64x128xbf16>
    %c0_2 = arith.constant 0 : index
    %c0_3 = arith.constant 0 : index
    %2 = vector.load %arg3[%c0_2, %c0_3] : memref<128x128xbf16, #tpu.memory_space<vmem>>, vector<128x128xbf16>
    %cst = arith.constant dense<0.000000e+00> : vector<64x128xf32>
    %3 = tpu.matmul %1, %2, %cst {dimension_numbers = #tpu.dot_dimension_numbers<[1], [0], [0], [1], [0, 0, 1, 1], [], []>} : vector<64x128xbf16>, vector<128x128xbf16>, vector<64x128xf32> -> vector<64x128xf32>
    %c0_4 = arith.constant 0 : index
    %c0_5 = arith.constant 0 : index
    %4 = vector.load %arg4[%c0_4, %c0_5] : memref<1x128xf32, #tpu.memory_space<vmem>>, vector<1x128xf32>
    %5 = vector.broadcast %4 : vector<1x128xf32> to vector<64x128xf32>
    %6 = arith.addf %3, %5 : vector<64x128xf32>
    %cst_6 = arith.constant 0.000000e+00 : f32
    %7 = vector.broadcast %cst_6 : f32 to vector<64x128xf32>
    %8 = arith.maximumf %6, %7 : vector<64x128xf32>
    %9 = arith.truncf %8 : vector<64x128xf32> to vector<64x128xbf16>
    %c0_7 = arith.constant 0 : index
    %c0_8 = arith.constant 0 : index
    %c0_9 = arith.constant 0 : index
    %10 = vector.load %arg5[%c0_7, %c0_8, %c0_9] : memref<1x64x128xbf16, #tpu.memory_space<vmem>>, vector<1x64x128xbf16>
    %11 = vector.shape_cast %10 : vector<1x64x128xbf16> to vector<64x128xbf16>
    %12 = vector.shape_cast %9 : vector<64x128xbf16> to vector<1x64x128xbf16>
    tpu.vector_store %arg5[%c0_7, %c0_8, %c0_9], %12 {strides = array<i32>} : memref<1x64x128xbf16, #tpu.memory_space<vmem>>, vector<1x64x128xbf16>,
    return
  }
  func.func @transform_0(%arg0: i32, %arg1: i32) -> (i32, i32, i32) {
    %c0_i32 = arith.constant 0 : i32
    %c0_i32_0 = arith.constant 0 : i32
    return %arg0, %arg1, %c0_i32 : i32, i32, i32
  }
  func.func @transform_1(%arg0: i32, %arg1: i32) -> (i32, i32) {
    %c0_i32 = arith.constant 0 : i32
    %c0_i32_0 = arith.constant 0 : i32
    %c0_i32_1 = arith.constant 0 : i32
    return %c0_i32, %c0_i32_0 : i32, i32
  }
  func.func @transform_2(%arg0: i32, %arg1: i32) -> (i32, i32) {
    %c0_i32 = arith.constant 0 : i32
    %c0_i32_0 = arith.constant 0 : i32
    %c0_i32_1 = arith.constant 0 : i32
    return %c0_i32, %c0_i32_0 : i32, i32
  }
  func.func @transform_3(%arg0: i32, %arg1: i32) -> (i32, i32, i32) {
    %c0_i32 = arith.constant 0 : i32
    %c0_i32_0 = arith.constant 0 : i32
    return %arg0, %arg1, %c0_i32 : i32, i32, i32
  }
}

module attributes {stable_mosaic.version = 11 : i64} {
  func.func @_upconv_kernel(%arg0: i32, %arg1: i32, %arg2: memref<1x128x64xbf16, #tpu.memory_space<vmem>>, %arg3: memref<64x128xbf16, #tpu.memory_space<vmem>>, %arg4: memref<1x128xf32, #tpu.memory_space<vmem>>, %arg5: memref<1x128x128xbf16, #tpu.memory_space<vmem>>) attributes {dimension_semantics = [#tpu.dimension_semantics<parallel>, #tpu.dimension_semantics<parallel>], iteration_bounds = array<i64: 2, 2>, scalar_prefetch = 0 : i64, scratch_operands = 0 : i64, tpu.core_type = #tpu.core_type<tc>, window_params = [{transform_indices = @transform_0, window_bounds = array<i64: 1, 128, 64>}, {pipeline_mode = #tpu.pipeline_mode<synchronous>, transform_indices = @transform_1, window_bounds = array<i64: 64, 128>}, {pipeline_mode = #tpu.pipeline_mode<synchronous>, transform_indices = @transform_2, window_bounds = array<i64: 1, 128>}, {transform_indices = @transform_3, window_bounds = array<i64: 1, 128, 128>}]} {
    %c0 = arith.constant 0 : index
    %c0_0 = arith.constant 0 : index
    %c0_1 = arith.constant 0 : index
    %0 = vector.load %arg2[%c0, %c0_0, %c0_1] : memref<1x128x64xbf16, #tpu.memory_space<vmem>>, vector<1x128x64xbf16>
    %1 = vector.shape_cast %0 : vector<1x128x64xbf16> to vector<128x64xbf16>
    %c0_2 = arith.constant 0 : index
    %c0_3 = arith.constant 0 : index
    %2 = vector.load %arg3[%c0_2, %c0_3] : memref<64x128xbf16, #tpu.memory_space<vmem>>, vector<64x128xbf16>
    %cst = arith.constant dense<0.000000e+00> : vector<128x128xf32>
    %3 = tpu.matmul %1, %2, %cst {dimension_numbers = #tpu.dot_dimension_numbers<[1], [0], [0], [1], [0, 0, 1, 1], [], []>} : vector<128x64xbf16>, vector<64x128xbf16>, vector<128x128xf32> -> vector<128x128xf32>
    %c0_4 = arith.constant 0 : index
    %c0_5 = arith.constant 0 : index
    %4 = vector.load %arg4[%c0_4, %c0_5] : memref<1x128xf32, #tpu.memory_space<vmem>>, vector<1x128xf32>
    %5 = vector.broadcast %4 : vector<1x128xf32> to vector<128x128xf32>
    %6 = arith.addf %3, %5 : vector<128x128xf32>
    %cst_6 = arith.constant 0.000000e+00 : f32
    %7 = vector.broadcast %cst_6 : f32 to vector<128x128xf32>
    %8 = arith.maximumf %6, %7 : vector<128x128xf32>
    %9 = arith.truncf %8 : vector<128x128xf32> to vector<128x128xbf16>
    %c0_7 = arith.constant 0 : index
    %c0_8 = arith.constant 0 : index
    %c0_9 = arith.constant 0 : index
    %10 = vector.load %arg5[%c0_7, %c0_8, %c0_9] : memref<1x128x128xbf16, #tpu.memory_space<vmem>>, vector<1x128x128xbf16>
    %11 = vector.shape_cast %10 : vector<1x128x128xbf16> to vector<128x128xbf16>
    %12 = vector.shape_cast %9 : vector<128x128xbf16> to vector<1x128x128xbf16>
    tpu.vector_store %arg5[%c0_7, %c0_8, %c0_9], %12 {strides = array<i32>} : memref<1x128x128xbf16, #tpu.memory_space<vmem>>, vector<1x128x128xbf16>,
    return
  }
  func.func @transform_0(%arg0: i32, %arg1: i32) -> (i32, i32, i32) {
    %c0_i32 = arith.constant 0 : i32
    %c0_i32_0 = arith.constant 0 : i32
    return %arg0, %arg1, %c0_i32 : i32, i32, i32
  }
  func.func @transform_1(%arg0: i32, %arg1: i32) -> (i32, i32) {
    %c0_i32 = arith.constant 0 : i32
    %c0_i32_0 = arith.constant 0 : i32
    %c0_i32_1 = arith.constant 0 : i32
    return %c0_i32, %c0_i32_0 : i32, i32
  }
  func.func @transform_2(%arg0: i32, %arg1: i32) -> (i32, i32) {
    %c0_i32 = arith.constant 0 : i32
    %c0_i32_0 = arith.constant 0 : i32
    %c0_i32_1 = arith.constant 0 : i32
    return %c0_i32, %c0_i32_0 : i32, i32
  }
  func.func @transform_3(%arg0: i32, %arg1: i32) -> (i32, i32, i32) {
    %c0_i32 = arith.constant 0 : i32
    %c0_i32_0 = arith.constant 0 : i32
    return %arg0, %arg1, %c0_i32 : i32, i32, i32
  }
}

module attributes {stable_mosaic.version = 11 : i64} {
  func.func @_outconv_kernel(%arg0: i32, %arg1: i32, %arg2: memref<1x34x32x24xbf16, #tpu.memory_space<vmem>>, %arg3: memref<3x24x128xbf16, #tpu.memory_space<vmem>>, %arg4: memref<1x128xf32, #tpu.memory_space<vmem>>, %arg5: memref<1x256x128xf32, #tpu.memory_space<vmem>>) attributes {dimension_semantics = [#tpu.dimension_semantics<parallel>, #tpu.dimension_semantics<parallel>], iteration_bounds = array<i64: 2, 4>, scalar_prefetch = 0 : i64, scratch_operands = 0 : i64, tpu.core_type = #tpu.core_type<tc>, window_params = [{transform_indices = @transform_0, window_bounds = array<i64: 1, 34, 32, 24>}, {pipeline_mode = #tpu.pipeline_mode<synchronous>, transform_indices = @transform_1, window_bounds = array<i64: 3, 24, 128>}, {pipeline_mode = #tpu.pipeline_mode<synchronous>, transform_indices = @transform_2, window_bounds = array<i64: 1, 128>}, {transform_indices = @transform_3, window_bounds = array<i64: 1, 256, 128>}]} {
    %c8_i32 = arith.constant 8 : i32
    %0 = arith.muli %arg1, %c8_i32 : i32
    %1 = tpu.assume_multiple %0, 8 : i32
    %cst = arith.constant 0.000000e+00 : f32
    %2 = vector.broadcast %cst : f32 to vector<256x128xf32>
    %c0_i32 = arith.constant 0 : i32
    %3 = arith.addi %1, %c0_i32 : i32
    %c0 = arith.constant 0 : index
    %4 = arith.index_cast %3 : i32 to index
    %c0_0 = arith.constant 0 : index
    %c0_1 = arith.constant 0 : index
    %5 = vector.load %arg2[%c0, %4, %c0_0, %c0_1] : memref<1x34x32x24xbf16, #tpu.memory_space<vmem>>, vector<1x8x32x24xbf16>
    %6 = vector.shape_cast %5 : vector<1x8x32x24xbf16> to vector<8x32x24xbf16>
    %7 = vector.shape_cast %6 : vector<8x32x24xbf16> to vector<256x24xbf16>
    %c0_2 = arith.constant 0 : index
    %c0_3 = arith.constant 0 : index
    %c0_4 = arith.constant 0 : index
    %8 = vector.load %arg3[%c0_2, %c0_3, %c0_4] : memref<3x24x128xbf16, #tpu.memory_space<vmem>>, vector<1x24x128xbf16>
    %9 = vector.shape_cast %8 : vector<1x24x128xbf16> to vector<24x128xbf16>
    %cst_5 = arith.constant dense<0.000000e+00> : vector<256x128xf32>
    %10 = tpu.matmul %7, %9, %cst_5 {dimension_numbers = #tpu.dot_dimension_numbers<[1], [0], [0], [1], [0, 0, 1, 1], [], []>} : vector<256x24xbf16>, vector<24x128xbf16>, vector<256x128xf32> -> vector<256x128xf32>
    %11 = arith.addf %2, %10 : vector<256x128xf32>
    %c1_i32 = arith.constant 1 : i32
    %12 = arith.addi %1, %c1_i32 : i32
    %c0_6 = arith.constant 0 : index
    %13 = arith.index_cast %12 : i32 to index
    %c0_7 = arith.constant 0 : index
    %c0_8 = arith.constant 0 : index
    %14 = vector.load %arg2[%c0_6, %13, %c0_7, %c0_8] : memref<1x34x32x24xbf16, #tpu.memory_space<vmem>>, vector<1x8x32x24xbf16>
    %15 = vector.shape_cast %14 : vector<1x8x32x24xbf16> to vector<8x32x24xbf16>
    %16 = vector.shape_cast %15 : vector<8x32x24xbf16> to vector<256x24xbf16>
    %c1 = arith.constant 1 : index
    %c0_9 = arith.constant 0 : index
    %c0_10 = arith.constant 0 : index
    %17 = vector.load %arg3[%c1, %c0_9, %c0_10] : memref<3x24x128xbf16, #tpu.memory_space<vmem>>, vector<1x24x128xbf16>
    %18 = vector.shape_cast %17 : vector<1x24x128xbf16> to vector<24x128xbf16>
    %cst_11 = arith.constant dense<0.000000e+00> : vector<256x128xf32>
    %19 = tpu.matmul %16, %18, %cst_11 {dimension_numbers = #tpu.dot_dimension_numbers<[1], [0], [0], [1], [0, 0, 1, 1], [], []>} : vector<256x24xbf16>, vector<24x128xbf16>, vector<256x128xf32> -> vector<256x128xf32>
    %20 = arith.addf %11, %19 : vector<256x128xf32>
    %c2_i32 = arith.constant 2 : i32
    %21 = arith.addi %1, %c2_i32 : i32
    %c0_12 = arith.constant 0 : index
    %22 = arith.index_cast %21 : i32 to index
    %c0_13 = arith.constant 0 : index
    %c0_14 = arith.constant 0 : index
    %23 = vector.load %arg2[%c0_12, %22, %c0_13, %c0_14] : memref<1x34x32x24xbf16, #tpu.memory_space<vmem>>, vector<1x8x32x24xbf16>
    %24 = vector.shape_cast %23 : vector<1x8x32x24xbf16> to vector<8x32x24xbf16>
    %25 = vector.shape_cast %24 : vector<8x32x24xbf16> to vector<256x24xbf16>
    %c2 = arith.constant 2 : index
    %c0_15 = arith.constant 0 : index
    %c0_16 = arith.constant 0 : index
    %26 = vector.load %arg3[%c2, %c0_15, %c0_16] : memref<3x24x128xbf16, #tpu.memory_space<vmem>>, vector<1x24x128xbf16>
    %27 = vector.shape_cast %26 : vector<1x24x128xbf16> to vector<24x128xbf16>
    %cst_17 = arith.constant dense<0.000000e+00> : vector<256x128xf32>
    %28 = tpu.matmul %25, %27, %cst_17 {dimension_numbers = #tpu.dot_dimension_numbers<[1], [0], [0], [1], [0, 0, 1, 1], [], []>} : vector<256x24xbf16>, vector<24x128xbf16>, vector<256x128xf32> -> vector<256x128xf32>
    %29 = arith.addf %20, %28 : vector<256x128xf32>
    %c0_18 = arith.constant 0 : index
    %c0_19 = arith.constant 0 : index
    %30 = vector.load %arg4[%c0_18, %c0_19] : memref<1x128xf32, #tpu.memory_space<vmem>>, vector<1x128xf32>
    %31 = vector.broadcast %30 : vector<1x128xf32> to vector<256x128xf32>
    %32 = arith.addf %29, %31 : vector<256x128xf32>
    %c0_20 = arith.constant 0 : index
    %c0_21 = arith.constant 0 : index
    %c0_22 = arith.constant 0 : index
    %33 = vector.load %arg5[%c0_20, %c0_21, %c0_22] : memref<1x256x128xf32, #tpu.memory_space<vmem>>, vector<1x256x128xf32>
    %34 = vector.shape_cast %33 : vector<1x256x128xf32> to vector<256x128xf32>
    %35 = vector.shape_cast %32 : vector<256x128xf32> to vector<1x256x128xf32>
    tpu.vector_store %arg5[%c0_20, %c0_21, %c0_22], %35 {strides = array<i32>} : memref<1x256x128xf32, #tpu.memory_space<vmem>>, vector<1x256x128xf32>,
    return
  }
  func.func @transform_0(%arg0: i32, %arg1: i32) -> (i32, i32, i32, i32) {
    %c0_i32 = arith.constant 0 : i32
    %c0_i32_0 = arith.constant 0 : i32
    %c0_i32_1 = arith.constant 0 : i32
    %c0_i32_2 = arith.constant 0 : i32
    return %arg0, %c0_i32, %c0_i32_0, %c0_i32_1 : i32, i32, i32, i32
  }
  func.func @transform_1(%arg0: i32, %arg1: i32) -> (i32, i32, i32) {
    %c0_i32 = arith.constant 0 : i32
    %c0_i32_0 = arith.constant 0 : i32
    %c0_i32_1 = arith.constant 0 : i32
    %c0_i32_2 = arith.constant 0 : i32
    return %c0_i32, %c0_i32_0, %c0_i32_1 : i32, i32, i32
  }
  func.func @transform_2(%arg0: i32, %arg1: i32) -> (i32, i32) {
    %c0_i32 = arith.constant 0 : i32
    %c0_i32_0 = arith.constant 0 : i32
    %c0_i32_1 = arith.constant 0 : i32
    return %c0_i32, %c0_i32_0 : i32, i32
  }
  func.func @transform_3(%arg0: i32, %arg1: i32) -> (i32, i32, i32) {
    %c0_i32 = arith.constant 0 : i32
    %c0_i32_0 = arith.constant 0 : i32
    return %arg0, %arg1, %c0_i32 : i32, i32, i32
  }
}

</mosaic_0001>

<bundles_post_ra>
// kernel: decoder_forward.7
= control target key start
LH: loop header
LB: loop body
LE: loop exit
PB: predicated region body
PF: predicated region fallthrough
CT: control target
= control target key end

     0   :  { %8 = vsyncpa [#allocation3], 0  ;;  %s1073_s0 = inlined_call_operand.vmem [shape: bf16[2,256], index: 0, kind: input, shape index: {}]   ;;  %s1074_s1 = inlined_call_operand.hbm [shape: bf16[256,1024], index: 1, kind: input, shape index: {}]   ;;  %s1075_s2 = inlined_call_operand.hbm [shape: f32[1,1024], index: 2, kind: input, shape index: {}]   ;;  %s1076_s3 = inlined_call_operand.vmem [shape: bf16[2,1024], index: 3, kind: output, shape index: {}]  }
   0x1   :  { %10 = vsyncpa [#allocation3 + $0x1], 0 }
   0x2   :  { %11 = vsyncpa [#allocation5], 0 }
   0x3   :  { %13 = vsyncpa [#allocation5 + $0x1], 0  ;;  %s883_s12 = smov 0   ;;  %s885_s13 = smov 0  }
   0x4   :  { %s887_s14 = smov 0   ;;  %s889_s15 = smov 0  }
   0x5 LB: > { %s608_s16 = sadd.s32 4294967295, %s855_s15   ;;  %s903_s17 = sadd.s32 1, %s855_s15   ;;  %s855_s15 = sphi %s889_s15, %s1086_s15   ;;  %s851_s14 = sphi %s887_s14, %s1085_s14   ;;  %s847_s13 = sphi %s885_s13, %s1084_s13   ;;  %s843_s12 = sphi %s883_s12, %s1083_s12  }
   0x6   : > { %s44_s18 = ssub.s32 %s855_s15, %s903_s17  ;;  %s47_s19 = sadd.s32 1, %s851_s14 }
   0x7   : > { %p45_p0 = scmp.eq.s32.totalorder %s44_s18, 0  ;;  %p54_p1 = scmp.ne.s32.totalorder %s851_s14, %s847_s13 }
   0x8   : > { %p55_p2 = scmp.eq.s32.totalorder %s855_s15, 0  ;;  %p60_p3 = scmp.ne.s32.totalorder %s847_s13, %s843_s12 }
   0x9   : > { %s913_s20 = scalar_select %p45_p0, %s851_s14, %s47_s19  }
   0xa   : > { %p56_p4 = por %p55_p2, %p54_p1  ;;  %p61_p5 = scmp.eq.s32.totalorder %s608_s16, 0 }
   0xb   : > { %p672_p6 = scmp.lt.s32.totalorder %s855_s15, 4  ;;  %s923_s22 = sand.u32 1, %s851_s14  }
   0xc   : > { %p918_p7 = por %p61_p5, %p60_p3  ;;  %s612_s23 = sshll.u32 %s923_s22, 8 }
   0xd   : > { %s659_s24 = sshll.u32 %s855_s15, 7  ;;  %s143_s28 = scalar_lea.vmem [#allocation2], %s612_s23 }
   0xe   : > { %s1078_s21 = scalar_select %p918_p7, 1, 0 }
   0xf   : > { %s930_s27 = scalar_lea.hbm %s1074_s1, %s659_s24  ;;  %s150_s29 = sshll.u32 %s143_s28, 4  ;;  %s932_s29 = int_to_ptr.vmem [resolvable:$true] %s150_s29 }
  0x10   : > { %p934_p8 = pnand %p672_p6, %p56_p4  ;;  %s140_s4 = scalar_lea.sflag [#allocation3], %s923_s22 }
  0x11   : > { %s757_s5 = scalar_lea.hbm %s930_s27, 4096  ;;  %s762_s8 = scalar_lea.hbm %s1074_s1, 16384 }
  0x12   : > { %p758_p9 = scmp.ne.s32.totalorder %s930_s27, %s757_s5  ;;  %p759_p10 = pneg %p934_p8 }
  0x13   : > { %p763_p13 = scmp.lt.u32.totalorder %s930_s27, %s1074_s1  ;;  %p764_p0 = scmp.lt.u32.totalorder %s762_s8, %s757_s5 }
  0x14   : > { %p760_p11 = pnand %p759_p10, %p758_p9  ;;  %p766_p2 = scmp.lt.u32.totalorder %s757_s5, %s930_s27 }
  0x15   : > { %p765_p1 = por %p764_p0, %p763_p13 }
  0x16   : > { %p761_p12 = pneg %p760_p11 }
  0x17   : > { %p767_p3 = por %p766_p2, %p765_p1 }
  0x19   : > { %p768_p4 = pnand %p767_p3, %p761_p12 }
  0x1b   : > { %771 = shalt.err (!%p768_p4)
}
  0x1c   : > { %s772_s11 = scalar_lea.vmem %s932_s29, 4096  ;;  %s857_s12 = smov [#allocation2]  }
  0x1d   : > { %p773_p5 = scmp.ne.s32.totalorder %s932_s29, %s772_s11  ;;  %s777_s18 = sshll.u32 %s857_s12, 4  ;;  %s778_s18 = int_to_ptr.vmem [resolvable:$false] %s777_s18 }
  0x1e   : > { %s779_s19 = scalar_lea.vmem %s778_s18, 8192  ;;  %p780_p11 = scmp.lt.s32.totalorder %s932_s29, %s778_s18 }
  0x1f   : > { %p775_p6 = pnand %p773_p5, %p759_p10  ;;  %p781_p13 = scmp.lt.s32.totalorder %s779_s19, %s772_s11 }
  0x21   : > { %p776_p9 = pneg %p775_p6  ;;  %p782_p0 = por %p781_p13, %p780_p11 }
  0x23   : > { %p783_p1 = pnand %p782_p0, %p776_p9 }
  0x25   : > { %786 = shalt.err (!%p783_p1)
}
  0x26   : > { %s858_s23 = smov 512   ;;  %s859_s24 = smov 128  }
  0x27   : > { %s860_s25 = smov 8   ;;  %p618_p12 = scmp.ge.s32.totalorder %s855_s15, 1 }
  0x28   : > { %668 = dma.hbm_to_vmem [thread:$0]  (!%p934_p8), %s930_s27, 4096, %s932_s29, %s140_s4, %s858_s23, %s859_s24, %s860_s25  }
  0x29   : > { %p177_p2 = scmp.lt.s32.totalorder %s855_s15, 5  ;;  %s615_s26 = sshll.u32 %s923_s22, 1 }
  0x2a   : > { %s660_s5 = sshll.u32 %s855_s15, 5  ;;  %s164_s6 = scalar_lea.vmem [#allocation4], %s615_s26 }
  0x2b   : > { %p969_p3 = pnand %p618_p12, %p177_p2  ;;  %s172_s7 = sshll.u32 %s164_s6, 4  ;;  %s173_s7 = int_to_ptr.vmem [resolvable:$true] %s172_s7 }
  0x2c   : > { %s977_s10 = scalar_lea.hbm %s1075_s2, %s660_s5  ;;  %s161_s27 = scalar_lea.sflag [#allocation5], %s923_s22 }
  0x2d   : > { %s1080_s28 = scalar_select %p969_p3, 1, 0 }
  0x2e   : > { %s787_s29 = scalar_lea.hbm %s977_s10, 32  ;;  %s792_s12 = scalar_lea.hbm %s1075_s2, 128 }
  0x2f   : > { %p788_p4 = scmp.ne.s32.totalorder %s977_s10, %s787_s29  ;;  %p793_p9 = scmp.lt.u32.totalorder %s977_s10, %s1075_s2 }
  0x30   : > { %p794_p11 = scmp.lt.u32.totalorder %s792_s12, %s787_s29  ;;  %p796_p0 = scmp.lt.u32.totalorder %s787_s29, %s977_s10 }
  0x31   : > { %p790_p5 = pnand %p788_p4, %p759_p10 }
  0x32   : > { %p795_p13 = por %p794_p11, %p793_p9 }
  0x33   : > { %p791_p6 = pneg %p790_p5 }
  0x34   : > { %p797_p1 = por %p796_p0, %p795_p13 }
  0x36   : > { %p798_p12 = pnand %p797_p1, %p791_p6 }
  0x38   : > { %801 = shalt.err (!%p798_p12)
}
  0x39   : > { %s802_s22 = scalar_lea.vmem %s173_s7, 32  ;;  %s861_s23 = smov [#allocation4]  }
  0x3a   : > { %p803_p2 = scmp.ne.s32.totalorder %s173_s7, %s802_s22  ;;  %s807_s24 = sshll.u32 %s861_s23, 4  ;;  %s808_s24 = int_to_ptr.vmem [resolvable:$false] %s807_s24 }
  0x3b   : > { %s809_s25 = scalar_lea.vmem %s808_s24, 64  ;;  %p810_p7 = scmp.lt.s32.totalorder %s173_s7, %s808_s24 }
  0x3c   : > { %p805_p4 = pnand %p803_p2, %p759_p10  ;;  %p811_p3 = scmp.lt.s32.totalorder %s809_s25, %s802_s22 }
  0x3e   : > { %p806_p5 = pneg %p805_p4  ;;  %p812_p9 = por %p811_p3, %p810_p7 }
  0x40   : > { %p813_p11 = pnand %p812_p9, %p806_p5 }
  0x42   : > { %816 = shalt.err (!%p813_p11)
}
  0x43   : > { %671 = dma.hbm_to_vmem [thread:$0]  (!%p934_p8), %s977_s10, 32, %s173_s7, %s161_s27  }
  0x44   : > { %p1081_p6 = scmp.ne.s32.totalorder %s1080_s28, 0 }
  0x45   : > { %s183_s26 = sand.u32 (!%p1081_p6), 1, %s847_s13   ;;  %p1082_p10 = scmp.ne.s32.totalorder (!%p1081_p6), %s1078_s21, 0 }
  0x46   : > { %181 = sbr.rel (%p1081_p6) target bundleno = 368 (0x170), region = 32  ;;  %s619_s5 = sshll.u32 (!%p1081_p6), %s183_s26, 8 }
  0x47   : > { %s184_s6 = scalar_lea.sflag (!%p1081_p6), [#allocation3], %s183_s26  ;;  %s1002_s8 = scalar_lea.vmem (!%p1081_p6), [#allocation2], %s619_s5 }
  0x4d   : > { %834 = dma.done.wait (%p1082_p10), %s184_s6, 4096  }
  0x4e   : > { %836 = vsyncadd (%p1082_p10), %s184_s6, 4294963200  ;;  %s620_s9 = sshll.u32 %s183_s26, 1  ;;  %s193_s30 = scalar_lea.sflag [#allocation5], %s183_s26 }
  0x4f   : > { %s1008_s29 = scalar_lea.vmem [#allocation4], %s620_s9 }
  0x50   : > { %838 = dma.done.wait (%p1082_p10), %s193_s30, 32  }
  0x51   : > { %840 = vsyncadd (%p1082_p10), %s193_s30, 4294967264  ;;  %v709_v0 = vld [vmem:[%s1002_s8 + $0x4] ss:$8 sps:$4 sm:$0xff]   ;;  %v711_v1 = vld [vmem:[%s1002_s8] ss:$8 sps:$4 sm:$0xff]   ;;  %v265_v9 = vlaneseq  ;;  %s621_s7 = sshll.u32 %s608_s16, 1 }
  0x52   : > { %460 = vmatprep.subr.bf16.mxu0 %v709_v0  ;;  %v712_v2 = vld [vmem:[%s1002_s8 + $0x14] ss:$8 sps:$4 sm:$0xff]   ;;  %v714_v3 = vld [vmem:[%s1002_s8 + $0x10] ss:$8 sps:$4 sm:$0xff]   ;;  %v715_v4 = vld [vmem:[%s1002_s8 + $0x24] ss:$8 sps:$4 sm:$0xff]  }
  0x53   : > { %461 = vmatpush1.bf16.msra.mxu0 %v711_v1  ;;  %v717_v5 = vld [vmem:[%s1002_s8 + $0x20] ss:$8 sps:$4 sm:$0xff]   ;;  %v718_v6 = vld [vmem:[%s1002_s8 + $0x34] ss:$8 sps:$4 sm:$0xff]   ;;  %v720_v7 = vld [vmem:[%s1002_s8 + $0x30] ss:$8 sps:$4 sm:$0xff]  }
  0x54   : > { %462 = vmatprep.subr.bf16.mxu0 %v712_v2  ;;  %v721_v8 = vld [vmem:[%s1002_s8 + $0x44] ss:$8 sps:$4 sm:$0xff]   ;;  %v862_v10 = vmov 1966171168   ;;  %v723_v12 = vld [vmem:[%s1002_s8 + $0x40] ss:$8 sps:$4 sm:$0xff]  }
  0x55   : > { %v285_v11 = vunpack.c.l.s4 %v862_v10  ;;  %v724_v13 = vld [vmem:[%s1002_s8 + $0x54] ss:$8 sps:$4 sm:$0xff]   ;;  %v266_v14 = vshrl.u32 %v265_v9, 7  ;;  %v726_v16 = vld [vmem:[%s1002_s8 + $0x50] ss:$8 sps:$4 sm:$0xff]   ;;  %p226_p7 = scmp.lt.s32.totalorder %s621_s7, 7 }
  0x56   : > { %v727_v17 = vld [vmem:[%s1002_s8 + $0x64] ss:$8 sps:$4 sm:$0xff]   ;;  %v622_v19 = vld.sshfl [vmem:[%s1073_s0] sm:$0x11 pattern:$0x75316420] }
  0x57   : > { %463 = vmatpush1.bf16.msra.mxu0 %v714_v3  ;;  %v286_v15 = vunpack.c.0.s8 %v285_v11  ;;  %v283_v20 = vcombine.high %v622_v19, %v622_v19  ;;  %v729_v21 = vld [vmem:[%s1002_s8 + $0x60] ss:$8 sps:$4 sm:$0xff]   ;;  %v730_v22 = vld [vmem:[%s1002_s8 + $0x74] ss:$8 sps:$4 sm:$0xff]   ;;  %v732_v24 = vld [vmem:[%s1002_s8 + $0x70] ss:$8 sps:$4 sm:$0xff]  }
  0x58   : > { %464 = vmatprep.subr.bf16.mxu0 %v715_v4  ;;  %v733_v25 = vld [vmem:[%s1002_s8 + $0x84] ss:$8 sps:$4 sm:$0xff]   ;;  %v735_v26 = vld [vmem:[%s1002_s8 + $0x80] ss:$8 sps:$4 sm:$0xff]   ;;  %v736_v27 = vld [vmem:[%s1002_s8 + $0x94] ss:$8 sps:$4 sm:$0xff]  }
  0x59   : > { %v1027_v18 = vsub.s32 %v286_v15, %v266_v14  ;;  %v738_v28 = vld [vmem:[%s1002_s8 + $0x90] ss:$8 sps:$4 sm:$0xff]   ;;  %v739_v29 = vld [vmem:[%s1002_s8 + $0xa4] ss:$8 sps:$4 sm:$0xff]   ;;  %v741_v30 = vld [vmem:[%s1002_s8 + $0xa0] ss:$8 sps:$4 sm:$0xff]  }
  0x5a   : > { %v742_v31 = vld [vmem:[%s1002_s8 + $0xb4] ss:$8 sps:$4 sm:$0xff]   ;;  %v744_v32 = vld [vmem:[%s1002_s8 + $0xb0] ss:$8 sps:$4 sm:$0xff]   ;;  %v745_v33 = vld [vmem:[%s1002_s8 + $0xc4] ss:$8 sps:$4 sm:$0xff]  }
  0x5b   : > { %465 = vmatpush1.bf16.msra.mxu0 %v717_v5  ;;  %v297_v23 = vrot.slane %v283_v20, %v1027_v18  ;;  %v747_v34 = vld [vmem:[%s1002_s8 + $0xc0] ss:$8 sps:$4 sm:$0xff]   ;;  %v748_v35 = vld [vmem:[%s1002_s8 + $0xd4] ss:$8 sps:$4 sm:$0xff]   ;;  %v750_v36 = vld [vmem:[%s1002_s8 + $0xd0] ss:$8 sps:$4 sm:$0xff]   ;;  %v290_v41 = vrot.slane %v622_v19, %v1027_v18 }
  0x5c   : > { %466 = vmatprep.subr.bf16.mxu0 %v718_v6  ;;  %v751_v37 = vld [vmem:[%s1002_s8 + $0xe4] ss:$8 sps:$4 sm:$0xff]   ;;  %v753_v38 = vld [vmem:[%s1002_s8 + $0xe0] ss:$8 sps:$4 sm:$0xff]   ;;  %v754_v39 = vld [vmem:[%s1002_s8 + $0xf4] ss:$8 sps:$4 sm:$0xff]  }
  0x5d   : > { %492 = vmatprep.mubr.bf16.mxu0 %v297_v23  ;;  %v756_v40 = vld [vmem:[%s1002_s8 + $0xf0] ss:$8 sps:$4 sm:$0xff]   ;;  %v267_v42 = vsub.s32 0, %v266_v14  ;;  %v263_v43 = vld [vmem:[%s1008_s29] sm:$0x3]  ;;  %v271_v44 = vsub.s32 1, %v266_v14 }
  0x5e   : > { %s1088_s7 = smov (!%p226_p7, %s621_s7), 7 }
  0x5f   : > { %467 = vmatpush1.bf16.msra.mxu0 %v720_v7  ;;  %v268_v45 = vrot.slane %v263_v43, %v267_v42  ;;  %v272_v46 = vrot.slane %v263_v43, %v271_v44  ;;  %s228_s4 = scalar_lea.vmem %s1076_s3, %s1088_s7 }
  0x60   : > { %468 = vmatprep.subr.bf16.mxu0 %v721_v8 }
  0x63   : > { %469 = vmatpush1.bf16.msra.mxu0 %v723_v12 }
  0x64   : > { %470 = vmatprep.subr.bf16.mxu0 %v724_v13 }
  0x67   : > { %471 = vmatpush1.bf16.msra.mxu0 %v726_v16 }
  0x68   : > { %472 = vmatprep.subr.bf16.mxu0 %v727_v17 }
  0x6b   : > { %473 = vmatpush1.bf16.msra.mxu0 %v729_v21 }
  0x6c   : > { %474 = vmatprep.subr.bf16.mxu0 %v730_v22 }
  0x6f   : > { %475 = vmatpush1.bf16.msra.mxu0 %v732_v24 }
  0x70   : > { %476 = vmatprep.subr.bf16.mxu0 %v733_v25 }
  0x73   : > { %477 = vmatpush1.bf16.msra.mxu0 %v735_v26 }
  0x74   : > { %478 = vmatprep.subr.bf16.mxu0 %v736_v27 }
  0x77   : > { %479 = vmatpush1.bf16.msra.mxu0 %v738_v28 }
  0x78   : > { %480 = vmatprep.subr.bf16.mxu0 %v739_v29 }
  0x7b   : > { %481 = vmatpush1.bf16.msra.mxu0 %v741_v30 }
  0x7c   : > { %482 = vmatprep.subr.bf16.mxu0 %v742_v31 }
  0x7f   : > { %483 = vmatpush1.bf16.msra.mxu0 %v744_v32 }
  0x80   : > { %484 = vmatprep.subr.bf16.mxu0 %v745_v33 }
  0x83   : > { %485 = vmatpush1.bf16.msra.mxu0 %v747_v34 }
  0x84   : > { %486 = vmatprep.subr.bf16.mxu0 %v748_v35 }
  0x87   : > { %487 = vmatpush1.bf16.msra.mxu0 %v750_v36 }
  0x88   : > { %488 = vmatprep.subr.bf16.mxu0 %v751_v37 }
  0x8b   : > { %489 = vmatpush1.bf16.msra.mxu0 %v753_v38 }
  0x8c   : > { %490 = vmatprep.subr.bf16.mxu0 %v754_v39 }
  0x8f   : > { %491 = vmatpush1.bf16.msra.mxu0 %v756_v40 }
  0x92   : > { %493 = vmatmul.mubr.bf16.vlgmr.msra.gmra.mrb[0].mxu0 %v290_v41 }
 0x165   : > { %v494_v47 = vpop.f32.mrb[0].mxu0 }
 0x166   : > { %v495_v48 = vadd.f32 %v494_v47, %v268_v45  ;;  %v496_v49 = vpop.f32.mrb[1].mxu0 }
 0x167   : > { %v497_v50 = vadd.f32 %v496_v49, %v272_v46  ;;  %v498_v51 = vpop.f32.mrb[2].mxu0 }
 0x168   : > { %v501_v52 = vmax.f32 %v495_v48, 0.0  ;;  %v499_v53 = vpop.f32.mrb[3].mxu0 }
 0x169   : > { %v502_v54 = vmax.f32 %v497_v50, 0.0 }
 0x16b   : > { %v655_v55 = vpack.c.bf16 %v502_v54, %v501_v52 }
 0x16d   : > { %v514_v56 = vrot.slane %v655_v55, %v1027_v18 }
 0x16f   : > { %656 = vst.sshfl [vmem:[%s228_s4] sm:$0x5 pattern:$0x73625140] %v514_v56 }
 0x170 PF: > { %p16_p8 = scmp.ge.s32.totalorder %s903_s17, 6   ;;  %s1083_s12 = smov %s847_s13 }
 0x171   : > { %s1084_s13 = smov %s851_s14  ;;  %s1085_s14 = smov %s913_s20 }
 0x172   : > { %s1086_s15 = smov %s903_s17  ;;  %18 = sbr.rel (!%p16_p8) target bundleno = 5 (0x5), region = 85 }
 0x179   :  { %544 = vsyncpa [#allocation3], 1 }
 0x17a   :  { %546 = vsyncpa [#allocation3 + $0x1], 1 }
 0x17b   :  { %547 = vsyncpa [#allocation5], 1 }
 0x17c   :  { %549 = vsyncpa [#allocation5 + $0x1], 1 }

// kernel: decoder_forward.6
= control target key start
LH: loop header
LB: loop body
LE: loop exit
PB: predicated region body
PF: predicated region fallthrough
CT: control target
= control target key end

     0   :  { %12 = vsyncpa [#allocation3], 0  ;;  %s855_s0 = inlined_call_operand.hbm [shape: f32[2,32], index: 0, kind: input, shape index: {}]   ;;  %s856_s1 = inlined_call_operand.hbm [shape: bf16[32,64], index: 1, kind: input, shape index: {}]   ;;  %s857_s2 = inlined_call_operand.hbm [shape: f32[1,64], index: 2, kind: input, shape index: {}]   ;;  %s858_s3 = inlined_call_operand.hbm [shape: bf16[64,128], index: 3, kind: input, shape index: {}]   ;;  %s859_s4 = inlined_call_operand.hbm [shape: f32[1,128], index: 4, kind: input, shape index: {}]   ;;  %s860_s5 = inlined_call_operand.hbm [shape: bf16[128,256], index: 5, kind: input, shape index: {}]   ;;  %s861_s6 = inlined_call_operand.hbm [shape: f32[1,256], index: 6, kind: input, shape index: {}]   ;;  %s862_s7 = inlined_call_operand.vmem [shape: bf16[2,256], index: 7, kind: output, shape index: {}]  }
   0x1   :  { %13 = vsyncpa [#allocation5], 0 }
   0x2   :  { %14 = vsyncpa [#allocation8], 0 }
   0x3   :  { %15 = vsyncpa [#allocation11], 0  ;;  %s713_s24 = smov [#allocation4]   ;;  %s551_s28 = scalar_lea.hbm %s856_s1, 256 }
   0x4   :  { %s31_s25 = sshll.u32 %s713_s24, 4  ;;  %p552_p0 = scmp.ne.s32.totalorder %s856_s1, %s551_s28  ;;  %s32_s25 = int_to_ptr.vmem [resolvable:$true] %s31_s25 }
   0x5   :  { %p555_p1 = scmp.lt.u32.totalorder %s551_s28, %s856_s1 }
   0x7   :  { %p557_p2 = pnand %p555_p1, %p552_p0 }
   0x9   :  { %560 = shalt.err (!%p557_p2)
}
   0xa   :  { %s561_s10 = scalar_lea.vmem %s32_s25, 256  ;;  %p566_p4 = scmp.lt.s32.totalorder %s32_s25, %s32_s25 }
   0xb   :  { %p562_p3 = scmp.ne.s32.totalorder %s32_s25, %s561_s10  ;;  %p567_p5 = scmp.lt.s32.totalorder %s561_s10, %s561_s10 }
   0xd   :  { %p568_p6 = por %p567_p5, %p566_p4 }
   0xf   :  { %p569_p7 = pnand %p568_p6, %p562_p3 }
  0x11   :  { %572 = shalt.err (!%p569_p7)
}
  0x12   :  { %s714_s11 = smov 64   ;;  %s715_s12 = smov 4  }
  0x13   :  { %37 = dma.hbm_to_vmem [thread:$0]  %s856_s1, 256, %s32_s25, [#allocation5], %s714_s11, %s714_s11, %s715_s12  }
  0x14   :  { %s716_s15 = smov [#allocation7]   ;;  %s717_s17 = smov [#allocation10]  }
  0x15   :  { %s53_s16 = sshll.u32 %s716_s15, 4  ;;  %s75_s18 = sshll.u32 %s717_s17, 4  ;;  %s54_s16 = int_to_ptr.vmem [resolvable:$true] %s53_s16  ;;  %s76_s18 = int_to_ptr.vmem [resolvable:$true] %s75_s18 }
  0x16   :  { %s573_s21 = scalar_lea.hbm %s858_s3, 512 }
  0x17   :  { %p574_p8 = scmp.ne.s32.totalorder %s858_s3, %s573_s21  ;;  %p577_p9 = scmp.lt.u32.totalorder %s573_s21, %s858_s3 }
  0x19   :  { %p579_p10 = pnand %p577_p9, %p574_p8 }
  0x1b   :  { %582 = shalt.err (!%p579_p10)
}
  0x1c   :  { %s583_s1 = scalar_lea.vmem %s54_s16, 512  ;;  %p588_p12 = scmp.lt.s32.totalorder %s54_s16, %s54_s16 }
  0x1d   :  { %p584_p11 = scmp.ne.s32.totalorder %s54_s16, %s583_s1  ;;  %p589_p13 = scmp.lt.s32.totalorder %s583_s1, %s583_s1 }
  0x1f   :  { %p590_p0 = por %p589_p13, %p588_p12 }
  0x21   :  { %p591_p1 = pnand %p590_p0, %p584_p11 }
  0x23   :  { %594 = shalt.err (!%p591_p1)
}
  0x24   :  { %59 = dma.hbm_to_vmem [thread:$0]  %s858_s3, 512, %s54_s16, [#allocation8], %s714_s11, %s714_s11, %s715_s12  }
  0x25   :  { %s595_s30 = scalar_lea.hbm %s860_s5, 2048 }
  0x26   :  { %p596_p2 = scmp.ne.s32.totalorder %s860_s5, %s595_s30  ;;  %p599_p3 = scmp.lt.u32.totalorder %s595_s30, %s860_s5 }
  0x28   :  { %p601_p4 = pnand %p599_p3, %p596_p2 }
  0x2a   :  { %604 = shalt.err (!%p601_p4)
}
  0x2b   :  { %s605_s14 = scalar_lea.vmem %s76_s18, 2048  ;;  %p610_p6 = scmp.lt.s32.totalorder %s76_s18, %s76_s18 }
  0x2c   :  { %p606_p5 = scmp.ne.s32.totalorder %s76_s18, %s605_s14  ;;  %p611_p7 = scmp.lt.s32.totalorder %s605_s14, %s605_s14 }
  0x2e   :  { %p612_p8 = por %p611_p7, %p610_p6 }
  0x30   :  { %p613_p9 = pnand %p612_p8, %p606_p5 }
  0x32   :  { %616 = shalt.err (!%p613_p9)
}
  0x33   :  { %s718_s3 = smov 128   ;;  %s719_s11 = smov 8  }
  0x34   :  { %81 = dma.hbm_to_vmem [thread:$0]  %s860_s5, 2048, %s76_s18, [#allocation11], %s718_s3, %s718_s3, %s719_s11  }
  0x35   :  { %s720_s16 = smov [#allocation2]   ;;  %s721_s19 = smov [#allocation6]  }
  0x36   :  { %s22_s17 = sshll.u32 %s720_s16, 4  ;;  %s44_s20 = sshll.u32 %s721_s19, 4  ;;  %s23_s17 = int_to_ptr.vmem [resolvable:$true] %s22_s17  ;;  %s45_s20 = int_to_ptr.vmem [resolvable:$true] %s44_s20 }
  0x37   :  { %s617_s23 = scalar_lea.hbm %s855_s0, 32 }
  0x38   :  { %p618_p10 = scmp.ne.s32.totalorder %s855_s0, %s617_s23  ;;  %p621_p11 = scmp.lt.u32.totalorder %s617_s23, %s855_s0 }
  0x3a   :  { %p623_p12 = pnand %p621_p11, %p618_p10 }
  0x3c   :  { %626 = shalt.err (!%p623_p12)
}
  0x3d   :  { %s627_s5 = scalar_lea.vmem %s23_s17, 32  ;;  %p632_p0 = scmp.lt.s32.totalorder %s23_s17, %s23_s17 }
  0x3e   :  { %p628_p13 = scmp.ne.s32.totalorder %s23_s17, %s627_s5  ;;  %p633_p1 = scmp.lt.s32.totalorder %s627_s5, %s627_s5 }
  0x40   :  { %p634_p2 = por %p633_p1, %p632_p0 }
  0x42   :  { %p635_p3 = pnand %p634_p2, %p628_p13 }
  0x44   :  { %638 = shalt.err (!%p635_p3)
}
  0x45   :  { %25 = dma.hbm_to_vmem [thread:$0]  %s855_s0, 32, %s23_s17, [#allocation3]  }
  0x46   :  { %s639_s30 = scalar_lea.hbm %s857_s2, 16 }
  0x47   :  { %p640_p4 = scmp.ne.s32.totalorder %s857_s2, %s639_s30  ;;  %p643_p5 = scmp.lt.u32.totalorder %s639_s30, %s857_s2 }
  0x49   :  { %p645_p6 = pnand %p643_p5, %p640_p4 }
  0x4b   :  { %648 = shalt.err (!%p645_p6)
}
  0x4c   :  { %s649_s14 = scalar_lea.vmem %s45_s20, 16  ;;  %s653_s3 = scalar_lea.vmem %s45_s20, 32 }
  0x4d   :  { %p650_p7 = scmp.ne.s32.totalorder %s45_s20, %s649_s14  ;;  %p654_p8 = scmp.lt.s32.totalorder %s45_s20, %s45_s20 }
  0x4e   :  { %p655_p9 = scmp.lt.s32.totalorder %s653_s3, %s649_s14 }
  0x50   :  { %p656_p10 = por %p655_p9, %p654_p8 }
  0x52   :  { %p657_p11 = pnand %p656_p10, %p650_p7 }
  0x54   :  { %660 = shalt.err (!%p657_p11)
}
  0x55   :  { %47 = dma.hbm_to_vmem [thread:$0]  %s857_s2, 16, %s45_s20, [#allocation5]  }
  0x56   :  { %s722_s12 = smov [#allocation9]   ;;  %s723_s16 = smov [#allocation12]  }
  0x57   :  { %s66_s15 = sshll.u32 %s722_s12, 4  ;;  %s88_s17 = sshll.u32 %s723_s16, 4  ;;  %s67_s15 = int_to_ptr.vmem [resolvable:$true] %s66_s15  ;;  %s89_s17 = int_to_ptr.vmem [resolvable:$true] %s88_s17 }
  0x58   :  { %s661_s22 = scalar_lea.hbm %s859_s4, 16 }
  0x59   :  { %p662_p12 = scmp.ne.s32.totalorder %s859_s4, %s661_s22  ;;  %p665_p13 = scmp.lt.u32.totalorder %s661_s22, %s859_s4 }
  0x5b   :  { %p667_p0 = pnand %p665_p13, %p662_p12 }
  0x5d   :  { %670 = shalt.err (!%p667_p0)
}
  0x5e   :  { %s671_s2 = scalar_lea.vmem %s67_s15, 16  ;;  %s675_s20 = scalar_lea.vmem %s67_s15, 32 }
  0x5f   :  { %p672_p1 = scmp.ne.s32.totalorder %s67_s15, %s671_s2  ;;  %p676_p2 = scmp.lt.s32.totalorder %s67_s15, %s67_s15 }
  0x60   :  { %p677_p3 = scmp.lt.s32.totalorder %s675_s20, %s671_s2 }
  0x62   :  { %p678_p4 = por %p677_p3, %p676_p2 }
  0x64   :  { %p679_p5 = pnand %p678_p4, %p672_p1 }
  0x66   :  { %682 = shalt.err (!%p679_p5)
}
  0x67   :  { %69 = dma.hbm_to_vmem [thread:$0]  %s859_s4, 16, %s67_s15, [#allocation8]  }
  0x68   :  { %s683_s28 = scalar_lea.hbm %s861_s6, 32 }
  0x69   :  { %p684_p6 = scmp.ne.s32.totalorder %s861_s6, %s683_s28  ;;  %p687_p7 = scmp.lt.u32.totalorder %s683_s28, %s861_s6 }
  0x6b   :  { %p689_p8 = pnand %p687_p7, %p684_p6 }
  0x6d   :  { %692 = shalt.err (!%p689_p8)
}
  0x6e   :  { %s693_s10 = scalar_lea.vmem %s89_s17, 32  ;;  %p698_p10 = scmp.lt.s32.totalorder %s89_s17, %s89_s17 }
  0x6f   :  { %p694_p9 = scmp.ne.s32.totalorder %s89_s17, %s693_s10  ;;  %p699_p11 = scmp.lt.s32.totalorder %s693_s10, %s693_s10 }
  0x71   :  { %p700_p12 = por %p699_p11, %p698_p10 }
  0x73   :  { %p701_p13 = pnand %p700_p12, %p694_p9 }
  0x75   :  { %704 = shalt.err (!%p701_p13)
}
  0x76   :  { %91 = dma.hbm_to_vmem [thread:$0]  %s861_s6, 32, %s89_s17, [#allocation11]  }
  0x77   :  { %705 = dma.done.wait [#allocation3], 32  }
  0x78   :  { %706 = vsyncadd [#allocation3], 4294967264 }
  0x79   :  { %707 = dma.done.wait [#allocation5], 272  }
  0x7a   :  { %708 = vsyncadd [#allocation5], 4294967024 }
  0x7b   :  { %709 = dma.done.wait [#allocation8], 528  }
  0x7c   :  { %710 = vsyncadd [#allocation8], 4294966768 }
  0x7d   :  { %711 = dma.done.wait [#allocation11], 2080  }
  0x7e   :  { %712 = vsyncadd [#allocation11], 4294965216  ;;  %v724_v0 = vmov 0.0   ;;  %vm725_vm0 = vmmov 0   ;;  %v521_v1 = vld [vmem:[#allocation4] sm:$0xff]   ;;  %v522_v2 = vld [vmem:[#allocation4 + $0x8] sm:$0xff]   ;;  %v288_v42 = vlaneseq }
  0x7f   :  { %486 = vmatprep.subr.bf16.mxu1 %v724_v0  ;;  %490 = vmatprep.mubr.msk.bf16.mxu1 %vm725_vm0, %v724_v0  ;;  %v114_v3 = vld [vmem:[#allocation2] sm:$0x3]  ;;  %v523_v4 = vld [vmem:[#allocation7] sm:$0xff]   ;;  %vm139_vm1 = vcmask 261120   ;;  %v525_v7 = vld [vmem:[#allocation7 + $0x10] sm:$0xff]   ;;  %vm224_vm2 = vcmask 523264  }
  0x80   :  { %487 = vmatpush3.bf16.msra.mxu1 %v521_v1  ;;  %v115_v5 = vpack.c.bf16 %v114_v3, %v114_v3  ;;  %v524_v6 = vld [vmem:[#allocation7 + $0x8] sm:$0xff]   ;;  %v526_v8 = vld [vmem:[#allocation7 + $0x18] sm:$0xff]   ;;  %v726_v33 = vmov 0   ;;  %v454_v34 = vld [vmem:[#allocation9] ss:$0 sm:$0xff]  ;;  %v289_v43 = vshrl.u32 %v288_v42, 7 }
  0x81   :  { %488 = vmatprep.subr.bf16.mxu1 %v724_v0  ;;  %v527_v9 = vld [vmem:[#allocation10 + $0x4] ss:$8 sps:$4 sm:$0xff]   ;;  %v529_v10 = vld [vmem:[#allocation10] ss:$8 sps:$4 sm:$0xff]   ;;  %v530_v11 = vld [vmem:[#allocation10 + $0x14] ss:$8 sps:$4 sm:$0xff]   ;;  %410 = vmatprep.mubr.bf16.mxu0 %v726_v33 }
  0x82   :  { %378 = vmatprep.subr.bf16.mxu0 %v527_v9  ;;  %v532_v12 = vld [vmem:[#allocation10 + $0x10] ss:$8 sps:$4 sm:$0xff]   ;;  %v533_v13 = vld [vmem:[#allocation10 + $0x24] ss:$8 sps:$4 sm:$0xff]   ;;  %v535_v14 = vld [vmem:[#allocation10 + $0x20] ss:$8 sps:$4 sm:$0xff]  }
  0x83   :  { %379 = vmatpush1.bf16.msra.mxu0 %v529_v10  ;;  %v536_v15 = vld [vmem:[#allocation10 + $0x34] ss:$8 sps:$4 sm:$0xff]   ;;  %v538_v16 = vld [vmem:[#allocation10 + $0x30] ss:$8 sps:$4 sm:$0xff]   ;;  %v539_v17 = vld [vmem:[#allocation10 + $0x44] ss:$8 sps:$4 sm:$0xff]  }
  0x84   :  { %489 = vmatpush3.bf16.msra.mxu1 %v522_v2  ;;  %380 = vmatprep.subr.bf16.mxu0 %v530_v11  ;;  %v541_v18 = vld [vmem:[#allocation10 + $0x40] ss:$8 sps:$4 sm:$0xff]   ;;  %v542_v19 = vld [vmem:[#allocation10 + $0x54] ss:$8 sps:$4 sm:$0xff]   ;;  %v544_v20 = vld [vmem:[#allocation10 + $0x50] ss:$8 sps:$4 sm:$0xff]  }
  0x85   :  { %494 = vmatprep.subr.bf16.mxu1 %v724_v0  ;;  %v545_v21 = vld [vmem:[#allocation10 + $0x64] ss:$8 sps:$4 sm:$0xff]   ;;  %v450_v22 = vld [vmem:[#allocation6] ss:$0 sm:$0xff]  ;;  %v547_v30 = vld [vmem:[#allocation10 + $0x60] ss:$8 sps:$4 sm:$0xff]  }
  0x86   :  { %v548_v31 = vld [vmem:[#allocation10 + $0x74] ss:$8 sps:$4 sm:$0xff]   ;;  %v550_v32 = vld [vmem:[#allocation10 + $0x70] ss:$8 sps:$4 sm:$0xff]   ;;  %v290_v44 = vsub.s32 0, %v289_v43  ;;  %v294_v46 = vsub.s32 1, %v289_v43 }
  0x87   :  { %491 = vmatmul.mubr.msk.bf16.vlgmr.msra.gmra.mrb[0].mxu1 %vm139_vm1, %v115_v5  ;;  %381 = vmatpush1.bf16.msra.mxu0 %v532_v12  ;;  %v286_v45 = vld [vmem:[#allocation12] sm:$0x3]  ;;  %v727_v47 = vmov 1966171168  }
  0x88   :  { %495 = vmatpush3.bf16.msra.mxu1 %v523_v4  ;;  %502 = vmatprep.mubr.msk.bf16.mxu1 %vm725_vm0, %v724_v0  ;;  %v427_v48 = vunpack.c.l.s4 %v727_v47  ;;  %v291_v49 = vrot.slane %v286_v45, %v290_v44  ;;  %v295_v50 = vrot.slane %v286_v45, %v294_v46 }
  0x89   :  { %496 = vmatprep.subr.bf16.mxu1 %v724_v0  ;;  %382 = vmatprep.subr.bf16.mxu0 %v533_v13 }
  0x8a   :  { %v428_v52 = vunpack.c.0.s8 %v427_v48 }
  0x8b   :  { %383 = vmatpush1.bf16.msra.mxu0 %v535_v14 }
  0x8c   :  { %497 = vmatpush3.bf16.msra.mxu1 %v524_v6  ;;  %384 = vmatprep.subr.bf16.mxu0 %v536_v15  ;;  %v431_v60 = vsub.s32 %v428_v52, %v289_v43 }
  0x8d   :  { %498 = vmatprep.subr.bf16.mxu1 %v724_v0 }
  0x8f   :  { %385 = vmatpush1.bf16.msra.mxu0 %v538_v16 }
  0x90   :  { %499 = vmatpush3.bf16.msra.mxu1 %v525_v7  ;;  %386 = vmatprep.subr.bf16.mxu0 %v539_v17 }
  0x91   :  { %500 = vmatprep.subr.bf16.mxu1 %v724_v0 }
  0x93   :  { %387 = vmatpush1.bf16.msra.mxu0 %v541_v18 }
  0x94   :  { %501 = vmatpush3.bf16.msra.mxu1 %v526_v8  ;;  %388 = vmatprep.subr.bf16.mxu0 %v542_v19 }
  0x97   :  { %389 = vmatpush1.bf16.msra.mxu0 %v544_v20 }
  0x98   :  { %390 = vmatprep.subr.bf16.mxu0 %v545_v21 }
  0x9b   :  { %391 = vmatpush1.bf16.msra.mxu0 %v547_v30 }
  0x9c   :  { %392 = vmatprep.subr.bf16.mxu0 %v548_v31 }
  0x9f   :  { %393 = vmatpush1.bf16.msra.mxu0 %v550_v32 }
 0x15a   :  { %v177_v23 = vpop.f32.mrb[0].mxu1 }
 0x15b   :  { %v178_v24 = vadd.f32 %v450_v22, %v177_v23  ;;  %v492_v25 = vpop.f32.mrb[1].mxu1 }
 0x15c   :  { %v180_v26 = vpop.f32.mrb[2].mxu1 }
 0x15d   :  { %v183_v27 = vmax.f32 %v178_v24, 0.0  ;;  %v493_v28 = vpop.f32.mrb[3].mxu1 }
 0x15f   :  { %v184_v29 = vpack.c.bf16 %v183_v27, %v183_v27 }
 0x161   :  { %503 = vmatmul.mubr.msk.bf16.vlgmr.msra.gmra.mrb[4].mxu1 %vm224_vm2, %v184_v29 }
 0x234   :  { %v262_v35 = vpop.f32.mrb[4].mxu1 }
 0x235   :  { %v263_v36 = vadd.f32 %v454_v34, %v262_v35  ;;  %v504_v37 = vpop.f32.mrb[5].mxu1 }
 0x236   :  { %v265_v38 = vpop.f32.mrb[6].mxu1 }
 0x237   :  { %v268_v39 = vmax.f32 %v263_v36, 0.0  ;;  %v505_v40 = vpop.f32.mrb[7].mxu1 }
 0x239   :  { %v269_v41 = vpack.c.bf16 %v268_v39, %v268_v39 }
 0x23b   :  { %411 = vmatmul.mubr.bf16.vlgmr.msra.gmra.mrb[0].mxu0 %v269_v41 }
 0x30e   :  { %v412_v51 = vpop.f32.mrb[0].mxu0 }
 0x30f   :  { %v413_v53 = vadd.f32 %v412_v51, %v291_v49  ;;  %v414_v54 = vpop.f32.mrb[1].mxu0 }
 0x310   :  { %v415_v55 = vadd.f32 %v414_v54, %v295_v50  ;;  %v416_v56 = vpop.f32.mrb[2].mxu0 }
 0x311   :  { %v419_v57 = vmax.f32 %v413_v53, 0.0  ;;  %v417_v58 = vpop.f32.mrb[3].mxu0 }
 0x312   :  { %v420_v59 = vmax.f32 %v415_v55, 0.0 }
 0x314   :  { %v476_v61 = vpack.c.bf16 %v420_v59, %v419_v57 }
 0x316   :  { %v432_v62 = vrot.slane %v476_v61, %v431_v60 }
 0x318   :  { %477 = vst.sshfl [vmem:[%s862_s7] sm:$0x5 pattern:$0x73625140] %v432_v62 }
 0x319   :  { %446 = vsyncpa [#allocation3], 1 }
 0x31a   :  { %447 = vsyncpa [#allocation5], 1 }
 0x31b   :  { %448 = vsyncpa [#allocation8], 1 }
 0x31c   :  { %449 = vsyncpa [#allocation11], 1 }

// kernel: decoder_forward.8
= control target key start
LH: loop header
LB: loop body
LE: loop exit
PB: predicated region body
PF: predicated region fallthrough
CT: control target
= control target key end

     0   :  { %8 = vsyncpa [#allocation3], 0  ;;  %s917_s0 = inlined_call_operand.vmem [shape: bf16[2,16,256], index: 0, kind: input, shape index: {}]   ;;  %s918_s1 = inlined_call_operand.hbm [shape: bf16[256,128], index: 1, kind: input, shape index: {}]   ;;  %s919_s2 = inlined_call_operand.hbm [shape: f32[1,128], index: 2, kind: input, shape index: {}]   ;;  %s920_s3 = inlined_call_operand.vmem [shape: bf16[2,16,128], index: 3, kind: output, shape index: {}]  }
   0x1   :  { %9 = vsyncpa [#allocation5], 0  ;;  %s799_s12 = smov 0   ;;  %s801_s13 = smov 0  }
   0x2   :  { %s803_s14 = smov 0  }
   0x3 LB: > { %s554_s15 = sadd.s32 4294967295, %s773_s14   ;;  %s27_s16 = sadd.s32 1, %s769_s13  ;;  %s773_s14 = sphi %s803_s14, %s15_s14   ;;  %s769_s13 = sphi %s801_s13, %s930_s13   ;;  %s765_s12 = sphi %s799_s12, %s929_s12  }
   0x4   : > { %p29_p0 = scmp.ge.s32.totalorder %s27_s16, 2  ;;  %p556_p1 = scmp.ge.s32.totalorder %s773_s14, 1 }
   0x5   : > { %p130_p2 = scmp.lt.s32.totalorder %s773_s14, 3  ;;  %p824_p4 = scmp.eq.s32.totalorder %s554_s15, 0 }
   0x6   : > { %s932_s16 = smov (%p29_p0, %s27_s16), 0  ;;  %s775_s19 = smov [#allocation2]  }
   0x7   : > { %p820_p3 = pnand %p556_p1, %p130_p2  ;;  %s142_s20 = sshll.u32 %s775_s19, 4  ;;  %s143_s20 = int_to_ptr.vmem [resolvable:$true] %s142_s20 }
   0x8   : > { %s925_s18 = scalar_select %p824_p4, 1, 0 }
   0x9   : > { %s924_s17 = scalar_select %p820_p3, 1, 0 }
   0xa   : > { %p629_p5 = pneg %p820_p3  ;;  %s776_s22 = smov [#allocation4]  }
   0xb   : > { %s156_s23 = sshll.u32 %s776_s22, 4  ;;  %s687_s26 = scalar_lea.hbm %s918_s1, 2048  ;;  %s836_s23 = int_to_ptr.vmem [resolvable:$true] %s156_s23 }
   0xc   : > { %p832_p6 = pnand %p824_p4, %p629_p5  ;;  %p688_p7 = scmp.ne.s32.totalorder %s918_s1, %s687_s26 }
   0xd   : > { %p694_p11 = scmp.lt.u32.totalorder %s687_s26, %s918_s1 }
   0xe   : > { %p689_p8 = pneg %p832_p6 }
  0x10   : > { %p690_p9 = pnand %p689_p8, %p688_p7 }
  0x12   : > { %p691_p10 = pneg %p690_p9 }
  0x14   : > { %p696_p12 = pnand %p694_p11, %p691_p10 }
  0x16   : > { %699 = shalt.err (!%p696_p12)
}
  0x17   : > { %s700_s4 = scalar_lea.vmem %s143_s20, 2048  ;;  %p708_p2 = scmp.lt.s32.totalorder %s143_s20, %s143_s20 }
  0x18   : > { %p701_p13 = scmp.ne.s32.totalorder %s143_s20, %s700_s4  ;;  %p709_p5 = scmp.lt.s32.totalorder %s700_s4, %s700_s4 }
  0x1a   : > { %p703_p0 = pnand %p701_p13, %p689_p8  ;;  %p710_p4 = por %p709_p5, %p708_p2 }
  0x1c   : > { %p704_p1 = pneg %p703_p0 }
  0x1e   : > { %p711_p3 = pnand %p710_p4, %p704_p1 }
  0x20   : > { %714 = shalt.err (!%p711_p3)
}
  0x21   : > { %s777_s5 = smov 64   ;;  %s778_s6 = smov 4  }
  0x22   : > { %632 = dma.hbm_to_vmem [thread:$0]  (!%p832_p6), %s918_s1, 2048, %s143_s20, [#allocation3], %s777_s5, %s777_s5, %s778_s6  }
  0x23   : > { %s715_s11 = scalar_lea.hbm %s919_s2, 16 }
  0x24   : > { %p716_p7 = scmp.ne.s32.totalorder %s919_s2, %s715_s11  ;;  %p722_p9 = scmp.lt.u32.totalorder %s715_s11, %s919_s2 }
  0x26   : > { %p718_p3 = pnand %p716_p7, %p689_p8 }
  0x28   : > { %p719_p4 = pneg %p718_p3 }
  0x2a   : > { %p724_p10 = pnand %p722_p9, %p719_p4 }
  0x2c   : > { %727 = shalt.err (!%p724_p10)
}
  0x2d   : > { %s728_s20 = scalar_lea.vmem %s836_s23, 16  ;;  %s735_s25 = scalar_lea.vmem %s836_s23, 32 }
  0x2e   : > { %p729_p11 = scmp.ne.s32.totalorder %s836_s23, %s728_s20  ;;  %p736_p0 = scmp.lt.s32.totalorder %s836_s23, %s836_s23 }
  0x2f   : > { %p737_p1 = scmp.lt.s32.totalorder %s735_s25, %s728_s20 }
  0x30   : > { %p731_p12 = pnand %p729_p11, %p689_p8 }
  0x31   : > { %p738_p2 = por %p737_p1, %p736_p0 }
  0x32   : > { %p732_p13 = pneg %p731_p12 }
  0x34   : > { %p739_p5 = pnand %p738_p2, %p732_p13 }
  0x36   : > { %742 = shalt.err (!%p739_p5)
}
  0x37   : > { %635 = dma.hbm_to_vmem [thread:$0]  (!%p832_p6), %s919_s2, 16, %s836_s23, [#allocation5]  }
  0x38   : > { %p927_p7 = scmp.ne.s32.totalorder %s924_s17, 0 }
  0x39   : > { %p928_p8 = scmp.ne.s32.totalorder (!%p927_p7), %s925_s18, 0 }
  0x3a   : > { %183 = sbr.rel (%p927_p7) target bundleno = 325 (0x145), region = 32 }
  0x41   : > { %756 = dma.done.wait (%p928_p8), [#allocation3], 2048  }
  0x42   : > { %758 = vsyncadd (%p928_p8), [#allocation3], 4294965248 }
  0x43   : > { %760 = dma.done.wait (%p928_p8), [#allocation5], 16  }
  0x44   : > { %762 = vsyncadd (%p928_p8), [#allocation5], 4294967280  ;;  %v668_v0 = vld [vmem:[#allocation2 + $0x40] sm:$0xff]   ;;  %v670_v2 = vld [vmem:[#allocation2 + $0x48] sm:$0xff]   ;;  %p221_p6 = scmp.lt.s32.totalorder %s765_s12, 1 }
  0x45   : > { %v669_v1 = vld [vmem:[#allocation2] sm:$0xff]   ;;  %599 = vmatprep.subr.bf16.mxu0 %v668_v0  ;;  %v671_v3 = vld [vmem:[#allocation2 + $0x8] sm:$0xff]   ;;  %v672_v4 = vld [vmem:[#allocation2 + $0x50] sm:$0xff]  }
  0x46   : > { %600 = vmatpush3.bf16.msra.mxu0 %v669_v1  ;;  %v673_v5 = vld [vmem:[#allocation2 + $0x10] sm:$0xff]   ;;  %s934_s12 = smov (!%p221_p6, %s765_s12), 1  ;;  %v674_v6 = vld [vmem:[#allocation2 + $0x58] sm:$0xff]   ;;  %v676_v8 = vld [vmem:[#allocation2 + $0x60] sm:$0xff]  }
  0x47   : > { %601 = vmatprep.subr.bf16.mxu0 %v670_v2  ;;  %v675_v7 = vld [vmem:[#allocation2 + $0x18] sm:$0xff]   ;;  %s590_s17 = sshll.u32 %s934_s12, 4  ;;  %v677_v9 = vld [vmem:[#allocation2 + $0x20] sm:$0xff]   ;;  %v678_v10 = vld [vmem:[#allocation2 + $0x68] sm:$0xff]   ;;  %s591_s28 = sshll.u32 %s934_s12, 3 }
  0x48   : > { %s229_s23 = scalar_lea.vmem %s917_s0, %s590_s17  ;;  %v679_v12 = vld [vmem:[#allocation2 + $0x28] sm:$0xff]   ;;  %v680_v13 = vld [vmem:[#allocation2 + $0x70] sm:$0xff]   ;;  %v682_v15 = vld [vmem:[#allocation2 + $0x78] sm:$0xff]   ;;  %s239_s4 = scalar_lea.vmem %s920_s3, %s591_s28 }
  0x49   : > { %v686_v11 = vld [vmem:[%s229_s23 + $0x4] ss:$8 sps:$4 sm:$0xff]   ;;  %v681_v14 = vld [vmem:[#allocation2 + $0x30] sm:$0xff]   ;;  %v683_v16 = vld [vmem:[#allocation2 + $0x38] sm:$0xff]  }
  0x4a   : > { %602 = vmatpush3.bf16.msra.mxu0 %v671_v3  ;;  %421 = vmatprep.mubr.bf16.mxu0 %v686_v11  ;;  %v684_v17 = vld [vmem:[%s229_s23] ss:$8 sps:$4 sm:$0xff]  }
  0x4b   : > { %603 = vmatprep.subr.bf16.mxu0 %v672_v4  ;;  %v567_v19 = vld [vmem:[#allocation4] ss:$0 sm:$0xff] }
  0x4e   : > { %604 = vmatpush3.bf16.msra.mxu0 %v673_v5 }
  0x4f   : > { %605 = vmatprep.subr.bf16.mxu0 %v674_v6 }
  0x52   : > { %606 = vmatpush3.bf16.msra.mxu0 %v675_v7 }
  0x53   : > { %607 = vmatprep.subr.bf16.mxu0 %v676_v8 }
  0x56   : > { %608 = vmatpush3.bf16.msra.mxu0 %v677_v9 }
  0x57   : > { %609 = vmatprep.subr.bf16.mxu0 %v678_v10 }
  0x5a   : > { %610 = vmatpush3.bf16.msra.mxu0 %v679_v12 }
  0x5b   : > { %611 = vmatprep.subr.bf16.mxu0 %v680_v13 }
  0x5e   : > { %612 = vmatpush3.bf16.msra.mxu0 %v681_v14 }
  0x5f   : > { %613 = vmatprep.subr.bf16.mxu0 %v682_v15 }
  0x62   : > { %614 = vmatpush3.bf16.msra.mxu0 %v683_v16 }
  0x65   : > { %422 = vmatmul.mubr.bf16.vlgmr.msra.gmra.mrb[0].mxu0 %v684_v17 }
 0x138   : > { %v615_v18 = vpop.f32.mrb[0].mxu0 }
 0x139   : > { %v616_v20 = vpop.f32.mrb[1].mxu0 }
 0x13a   : > { %v617_v21 = vadd.f32 %v616_v20, %v615_v18  ;;  %v618_v22 = vpop.f32.mrb[2].mxu0 }
 0x13b   : > { %v619_v23 = vpop.f32.mrb[3].mxu0 }
 0x13c   : > { %v424_v24 = vadd.f32 %v617_v21, %v567_v19  ;;  %v620_v25 = vadd.f32 %v619_v23, %v618_v22 }
 0x13e   : > { %v427_v26 = vadd.f32 %v620_v25, %v567_v19  ;;  %v430_v27 = vmax.f32 %v424_v24, 0.0 }
 0x140   : > { %v431_v28 = vmax.f32 %v427_v26, 0.0 }
 0x142   : > { %v597_v29 = vpack.c.bf16 %v431_v28, %v430_v27 }
 0x144   : > { %598 = vst [vmem:[%s239_s4] sm:$0xff] %v597_v29  }
 0x145 PF: > { %s15_s14 = sadd.s32 1, %s773_s14   ;;  %s929_s12 = smov %s769_s13 }
 0x146   : > { %p12_p3 = scmp.ge.s32.totalorder %s15_s14, 4   ;;  %s930_s13 = smov %s932_s16 }
 0x148   :  { %14 = sbr.rel (!%p12_p3) target bundleno = 3 (0x3), region = 71 }
 0x14f   :  { %472 = vsyncpa [#allocation3], 1 }
 0x150   :  { %474 = vsyncpa [#allocation3 + $0x1], 1 }
 0x151   :  { %475 = vsyncpa [#allocation5], 1 }

// kernel: decoder_forward.9
= control target key start
LH: loop header
LB: loop body
LE: loop exit
PB: predicated region body
PF: predicated region fallthrough
CT: control target
= control target key end

     0   :  { %8 = vsyncpa [#allocation3], 0  ;;  %s983_s0 = inlined_call_operand.vmem [shape: bf16[2,64,128], index: 0, kind: input, shape index: {}]   ;;  %s984_s1 = inlined_call_operand.hbm [shape: bf16[128,128], index: 1, kind: input, shape index: {}]   ;;  %s985_s2 = inlined_call_operand.hbm [shape: f32[1,128], index: 2, kind: input, shape index: {}]   ;;  %s986_s3 = inlined_call_operand.vmem [shape: bf16[2,64,128], index: 3, kind: output, shape index: {}]  }
   0x1   :  { %9 = vsyncpa [#allocation5], 0  ;;  %s856_s12 = smov 0   ;;  %s858_s13 = smov 0  }
   0x2   :  { %s860_s14 = smov 0  }
   0x3 LB: > { %s564_s15 = sadd.s32 4294967295, %s830_s14   ;;  %s27_s16 = sadd.s32 1, %s826_s13  ;;  %s830_s14 = sphi %s860_s14, %s15_s14   ;;  %s826_s13 = sphi %s858_s13, %s996_s13   ;;  %s822_s12 = sphi %s856_s12, %s995_s12  }
   0x4   : > { %p29_p0 = scmp.ge.s32.totalorder %s27_s16, 2  ;;  %p566_p1 = scmp.ge.s32.totalorder %s830_s14, 1 }
   0x5   : > { %p130_p2 = scmp.lt.s32.totalorder %s830_s14, 3  ;;  %p881_p4 = scmp.eq.s32.totalorder %s564_s15, 0 }
   0x6   : > { %s998_s16 = smov (%p29_p0, %s27_s16), 0  ;;  %s832_s19 = smov [#allocation2]  }
   0x7   : > { %p877_p3 = pnand %p566_p1, %p130_p2  ;;  %s142_s20 = sshll.u32 %s832_s19, 4  ;;  %s143_s20 = int_to_ptr.vmem [resolvable:$true] %s142_s20 }
   0x8   : > { %s991_s18 = scalar_select %p881_p4, 1, 0 }
   0x9   : > { %s990_s17 = scalar_select %p877_p3, 1, 0 }
   0xa   : > { %p693_p5 = pneg %p877_p3  ;;  %s833_s22 = smov [#allocation4]  }
   0xb   : > { %s156_s23 = sshll.u32 %s833_s22, 4  ;;  %s744_s26 = scalar_lea.hbm %s984_s1, 1024  ;;  %s893_s23 = int_to_ptr.vmem [resolvable:$true] %s156_s23 }
   0xc   : > { %p889_p6 = pnand %p881_p4, %p693_p5  ;;  %p745_p7 = scmp.ne.s32.totalorder %s984_s1, %s744_s26 }
   0xd   : > { %p751_p11 = scmp.lt.u32.totalorder %s744_s26, %s984_s1 }
   0xe   : > { %p746_p8 = pneg %p889_p6 }
  0x10   : > { %p747_p9 = pnand %p746_p8, %p745_p7 }
  0x12   : > { %p748_p10 = pneg %p747_p9 }
  0x14   : > { %p753_p12 = pnand %p751_p11, %p748_p10 }
  0x16   : > { %756 = shalt.err (!%p753_p12)
}
  0x17   : > { %s757_s4 = scalar_lea.vmem %s143_s20, 1024  ;;  %p765_p2 = scmp.lt.s32.totalorder %s143_s20, %s143_s20 }
  0x18   : > { %p758_p13 = scmp.ne.s32.totalorder %s143_s20, %s757_s4  ;;  %p766_p5 = scmp.lt.s32.totalorder %s757_s4, %s757_s4 }
  0x1a   : > { %p760_p0 = pnand %p758_p13, %p746_p8  ;;  %p767_p4 = por %p766_p5, %p765_p2 }
  0x1c   : > { %p761_p1 = pneg %p760_p0 }
  0x1e   : > { %p768_p3 = pnand %p767_p4, %p761_p1 }
  0x20   : > { %771 = shalt.err (!%p768_p3)
}
  0x21   : > { %s834_s5 = smov 64   ;;  %s835_s6 = smov 4  }
  0x22   : > { %696 = dma.hbm_to_vmem [thread:$0]  (!%p889_p6), %s984_s1, 1024, %s143_s20, [#allocation3], %s834_s5, %s834_s5, %s835_s6  }
  0x23   : > { %s772_s11 = scalar_lea.hbm %s985_s2, 16 }
  0x24   : > { %p773_p7 = scmp.ne.s32.totalorder %s985_s2, %s772_s11  ;;  %p779_p9 = scmp.lt.u32.totalorder %s772_s11, %s985_s2 }
  0x26   : > { %p775_p3 = pnand %p773_p7, %p746_p8 }
  0x28   : > { %p776_p4 = pneg %p775_p3 }
  0x2a   : > { %p781_p10 = pnand %p779_p9, %p776_p4 }
  0x2c   : > { %784 = shalt.err (!%p781_p10)
}
  0x2d   : > { %s785_s20 = scalar_lea.vmem %s893_s23, 16  ;;  %s792_s25 = scalar_lea.vmem %s893_s23, 32 }
  0x2e   : > { %p786_p11 = scmp.ne.s32.totalorder %s893_s23, %s785_s20  ;;  %p793_p0 = scmp.lt.s32.totalorder %s893_s23, %s893_s23 }
  0x2f   : > { %p794_p1 = scmp.lt.s32.totalorder %s792_s25, %s785_s20 }
  0x30   : > { %p788_p12 = pnand %p786_p11, %p746_p8 }
  0x31   : > { %p795_p2 = por %p794_p1, %p793_p0 }
  0x32   : > { %p789_p13 = pneg %p788_p12 }
  0x34   : > { %p796_p5 = pnand %p795_p2, %p789_p13 }
  0x36   : > { %799 = shalt.err (!%p796_p5)
}
  0x37   : > { %699 = dma.hbm_to_vmem [thread:$0]  (!%p889_p6), %s985_s2, 16, %s893_s23, [#allocation5]  }
  0x38   : > { %p993_p7 = scmp.ne.s32.totalorder %s990_s17, 0 }
  0x39   : > { %p994_p8 = scmp.ne.s32.totalorder (!%p993_p7), %s991_s18, 0 }
  0x3a   : > { %182 = sbr.rel (%p993_p7) target bundleno = 323 (0x143), region = 32 }
  0x41   : > { %813 = dma.done.wait (%p994_p8), [#allocation3], 1024  }
  0x42   : > { %815 = vsyncadd (%p994_p8), [#allocation3], 4294966272 }
  0x43   : > { %817 = dma.done.wait (%p994_p8), [#allocation5], 16  }
  0x44   : > { %819 = vsyncadd (%p994_p8), [#allocation5], 4294967280  ;;  %p219_p3 = scmp.lt.s32.totalorder %s822_s12, 1  ;;  %v732_v0 = vld [vmem:[#allocation2] sm:$0xff]   ;;  %v733_v1 = vld [vmem:[#allocation2 + $0x8] sm:$0xff]  }
  0x45   : > { %645 = vmatprep.subr.bf16.mxu0 %v732_v0  ;;  %669 = vmatprep.subr.bf16.mxu1 %v732_v0  ;;  %v734_v2 = vld [vmem:[#allocation2 + $0x10] sm:$0xff]   ;;  %v735_v3 = vld [vmem:[#allocation2 + $0x18] sm:$0xff]   ;;  %v736_v6 = vld [vmem:[#allocation2 + $0x20] sm:$0xff]  }
  0x46   : > { %s1000_s12 = smov (!%p219_p3, %s822_s12), 1  ;;  %646 = vmatpush3.bf16.msra.mxu0 %v732_v0  ;;  %677 = vmatpush3.bf16.msra.mxu1 %v732_v0  ;;  %v737_v7 = vld [vmem:[#allocation2 + $0x28] sm:$0xff]   ;;  %v738_v8 = vld [vmem:[#allocation2 + $0x30] sm:$0xff]   ;;  %v739_v9 = vld [vmem:[#allocation2 + $0x38] sm:$0xff]  }
  0x47   : > { %s600_s17 = sshll.u32 %s1000_s12, 5  ;;  %647 = vmatprep.subr.bf16.mxu0 %v733_v1  ;;  %670 = vmatprep.subr.bf16.mxu1 %v733_v1  ;;  %v577_v12 = vld [vmem:[#allocation4] ss:$0 sm:$0xff] }
  0x48   : > { %s963_s23 = scalar_lea.vmem %s983_s0, %s600_s17  ;;  %s236_s30 = scalar_lea.vmem %s986_s3, %s600_s17 }
  0x49   : > { %v740_v4 = vld [vmem:[%s963_s23] sm:$0xff]   ;;  %v741_v5 = vld [vmem:[%s963_s23 + $0x10] sm:$0xff]   ;;  %v742_v10 = vld [vmem:[%s963_s23 + $0x8] sm:$0xff]  }
  0x4a   : > { %648 = vmatpush3.bf16.msra.mxu0 %v733_v1  ;;  %678 = vmatpush3.bf16.msra.mxu1 %v733_v1  ;;  %v743_v11 = vld [vmem:[%s963_s23 + $0x18] sm:$0xff]  }
  0x4b   : > { %649 = vmatprep.subr.bf16.mxu0 %v734_v2  ;;  %671 = vmatprep.subr.bf16.mxu1 %v734_v2 }
  0x4c   : > { %661 = vmatprep.mubr.bf16.mxu0 %v740_v4  ;;  %665 = vmatprep.mubr.bf16.mxu1 %v741_v5 }
  0x4e   : > { %650 = vmatpush3.bf16.msra.mxu0 %v734_v2  ;;  %679 = vmatpush3.bf16.msra.mxu1 %v734_v2 }
  0x4f   : > { %651 = vmatprep.subr.bf16.mxu0 %v735_v3  ;;  %672 = vmatprep.subr.bf16.mxu1 %v735_v3 }
  0x52   : > { %652 = vmatpush3.bf16.msra.mxu0 %v735_v3  ;;  %680 = vmatpush3.bf16.msra.mxu1 %v735_v3 }
  0x53   : > { %653 = vmatprep.subr.bf16.mxu0 %v736_v6  ;;  %673 = vmatprep.subr.bf16.mxu1 %v736_v6 }
  0x56   : > { %654 = vmatpush3.bf16.msra.mxu0 %v736_v6  ;;  %681 = vmatpush3.bf16.msra.mxu1 %v736_v6 }
  0x57   : > { %655 = vmatprep.subr.bf16.mxu0 %v737_v7  ;;  %674 = vmatprep.subr.bf16.mxu1 %v737_v7 }
  0x5a   : > { %656 = vmatpush3.bf16.msra.mxu0 %v737_v7  ;;  %682 = vmatpush3.bf16.msra.mxu1 %v737_v7 }
  0x5b   : > { %657 = vmatprep.subr.bf16.mxu0 %v738_v8  ;;  %675 = vmatprep.subr.bf16.mxu1 %v738_v8 }
  0x5e   : > { %658 = vmatpush3.bf16.msra.mxu0 %v738_v8  ;;  %683 = vmatpush3.bf16.msra.mxu1 %v738_v8 }
  0x5f   : > { %659 = vmatprep.subr.bf16.mxu0 %v739_v9  ;;  %676 = vmatprep.subr.bf16.mxu1 %v739_v9 }
  0x62   : > { %660 = vmatpush3.bf16.msra.mxu0 %v739_v9  ;;  %684 = vmatpush3.bf16.msra.mxu1 %v739_v9 }
  0x65   : > { %662 = vmatmul.mubr.bf16.vlgmr.msra.gmra.mrb[0].mxu0 %v742_v10  ;;  %666 = vmatmul.mubr.bf16.vlgmr.msra.gmra.mrb[0].mxu1 %v743_v11 }
 0x138   : > { %v663_v13 = vpop.f32.mrb[0].mxu0  ;;  %v667_v14 = vpop.f32.mrb[0].mxu1 }
 0x139   : > { %v385_v15 = vadd.f32 %v663_v13, %v577_v12  ;;  %v401_v16 = vadd.f32 %v667_v14, %v577_v12  ;;  %v376_v17 = vpop.f32.mrb[1].mxu0  ;;  %v392_v18 = vpop.f32.mrb[1].mxu1 }
 0x13a   : > { %v377_v19 = vadd.f32 %v577_v12, %v376_v17  ;;  %v393_v20 = vadd.f32 %v577_v12, %v392_v18  ;;  %v664_v21 = vpop.f32.mrb[2].mxu0  ;;  %v668_v22 = vpop.f32.mrb[2].mxu1 }
 0x13b   : > { %v388_v23 = vadd.f32 %v664_v21, %v577_v12  ;;  %v404_v24 = vadd.f32 %v668_v22, %v577_v12  ;;  %v379_v25 = vpop.f32.mrb[3].mxu0  ;;  %v395_v26 = vpop.f32.mrb[3].mxu1  ;;  %v409_v29 = vmax.f32 %v385_v15, 0.0  ;;  %v413_v30 = vmax.f32 %v401_v16, 0.0 }
 0x13c   : > { %v380_v27 = vadd.f32 %v577_v12, %v379_v25  ;;  %v396_v28 = vadd.f32 %v577_v12, %v395_v26  ;;  %v407_v33 = vmax.f32 %v377_v19, 0.0  ;;  %v411_v34 = vmax.f32 %v393_v20, 0.0 }
 0x13d   : > { %v410_v31 = vmax.f32 %v388_v23, 0.0  ;;  %v414_v32 = vmax.f32 %v404_v24, 0.0 }
 0x13e   : > { %v408_v35 = vmax.f32 %v380_v27, 0.0  ;;  %v412_v36 = vmax.f32 %v396_v28, 0.0 }
 0x13f   : > { %v618_v37 = vpack.c.bf16 %v410_v31, %v409_v29  ;;  %v628_v38 = vpack.c.bf16 %v414_v32, %v413_v30 }
 0x140   : > { %v613_v39 = vpack.c.bf16 %v408_v35, %v407_v33  ;;  %v623_v40 = vpack.c.bf16 %v412_v36, %v411_v34 }
 0x141   : > { %630 = vst [vmem:[%s236_s30 + $0x8] sm:$0xff] %v618_v37   ;;  %632 = vst [vmem:[%s236_s30 + $0x18] sm:$0xff] %v628_v38  }
 0x142   : > { %614 = vst [vmem:[%s236_s30] sm:$0xff] %v613_v39   ;;  %631 = vst [vmem:[%s236_s30 + $0x10] sm:$0xff] %v623_v40  }
 0x143 PF: > { %s15_s14 = sadd.s32 1, %s830_s14   ;;  %s995_s12 = smov %s826_s13 }
 0x144   : > { %p12_p6 = scmp.ge.s32.totalorder %s15_s14, 4   ;;  %s996_s13 = smov %s998_s16 }
 0x146   :  { %14 = sbr.rel (!%p12_p6) target bundleno = 3 (0x3), region = 71 }
 0x14d   :  { %485 = vsyncpa [#allocation3], 1 }
 0x14e   :  { %487 = vsyncpa [#allocation3 + $0x1], 1 }
 0x14f   :  { %488 = vsyncpa [#allocation5], 1 }

// kernel: decoder_forward.10
= control target key start
LH: loop header
LB: loop body
LE: loop exit
PB: predicated region body
PF: predicated region fallthrough
CT: control target
= control target key end

     0   :  { %s883_s12 = smov 0   ;;  %s885_s13 = smov 0   ;;  %s977_s0 = inlined_call_operand.vmem [shape: bf16[2,256,64], index: 0, kind: input, shape index: {}]   ;;  %s978_s1 = inlined_call_operand.vmem [shape: bf16[64,128], index: 1, kind: input, shape index: {}]   ;;  %s979_s2 = inlined_call_operand.vmem [shape: f32[1,128], index: 2, kind: input, shape index: {}]   ;;  %s980_s3 = inlined_call_operand.vmem [shape: bf16[2,256,128], index: 3, kind: output, shape index: {}]  }
   0x1   :  { %s887_s14 = smov 0   ;;  %s889_s15 = smov 0  }
   0x2   :  { %s891_s16 = smov 0  }
   0x3 LB: > { %s22_s17 = sadd.s32 1, %s853_s14  ;;  %s25_s18 = sadd.s32 1, %s857_s15  ;;  %s861_s16 = sphi %s891_s16, %s13_s16   ;;  %s857_s15 = sphi %s889_s15, %s984_s15   ;;  %s853_s14 = sphi %s887_s14, %s983_s14   ;;  %s849_s13 = sphi %s885_s13, %s982_s13   ;;  %s845_s12 = sphi %s883_s12, %s981_s12  }
   0x4   : > { %p23_p0 = scmp.ge.s32.totalorder %s22_s17, 2  ;;  %p618_p1 = scmp.ge.s32.totalorder %s861_s16, 1 }
   0x5   : > { %p158_p2 = scmp.lt.s32.totalorder %s861_s16, 5 }
   0x6   : > { %s986_s17 = smov (%p23_p0, %s22_s17), 0  ;;  %s988_s18 = smov (!%p23_p0, %s25_s18), %s857_s15 }
   0x7   : > { %p159_p3 = pnand %p618_p1, %p158_p2  ;;  %p27_p4 = scmp.ge.s32.totalorder %s988_s18, 2 }
   0x8   : > { %v811_v0 = vld [vmem:[%s978_s1] sm:$0xff] (!%p159_p3)   ;;  %s619_s21 = sshll.u32 (!%p159_p3), %s845_s12, 4  ;;  %v812_v1 = vld [vmem:[%s978_s1 + $0x8] sm:$0xff] (!%p159_p3)   ;;  %p191_p5 = scmp.lt.s32.totalorder (!%p159_p3), %s849_s13, 1  ;;  %v813_v2 = vld [vmem:[%s978_s1 + $0x10] sm:$0xff] (!%p159_p3)   ;;  %vm306_vm0 = vcmask (!%p159_p3), 523264  }
   0x9   : > { %s990_s18 = smov (%p27_p4, %s988_s18), 0  ;;  %162 = sbr.rel (%p159_p3) target bundleno = 257 (0x101), region = 32 }
   0xa   : > { %739 = vmatprep.subr.bf16.mxu0 (!%p159_p3), %v811_v0  ;;  %763 = vmatprep.subr.bf16.mxu1 (!%p159_p3), %v811_v0  ;;  %p193_p6 = scmp.lt.s32.totalorder (!%p159_p3), %s619_s21, 31  ;;  %v814_v3 = vld [vmem:[%s978_s1 + $0x18] sm:$0xff] (!%p159_p3)   ;;  %v625_v12 = vld [vmem:[%s979_s2] ss:$0 sm:$0xff] (!%p159_p3) }
   0xb   : > { %740 = vmatpush3.bf16.msra.mxu0 (!%p159_p3), %v811_v0  ;;  %767 = vmatpush3.bf16.msra.mxu1 (!%p159_p3), %v811_v0 }
   0xc   : > { %741 = vmatprep.subr.bf16.mxu0 (!%p159_p3), %v812_v1  ;;  %764 = vmatprep.subr.bf16.mxu1 (!%p159_p3), %v812_v1 }
   0xf   : > { %742 = vmatpush3.bf16.msra.mxu0 (!%p159_p3), %v812_v1  ;;  %768 = vmatpush3.bf16.msra.mxu1 (!%p159_p3), %v812_v1 }
  0x10   : > { %s992_s13 = smov (!%p191_p5, %s849_s13), 1  ;;  %s994_s21 = smov (!%p193_p6, %s619_s21), 31  ;;  %743 = vmatprep.subr.bf16.mxu0 %v813_v2  ;;  %765 = vmatprep.subr.bf16.mxu1 %v813_v2 }
  0x11   : > { %s620_s26 = sshll.u32 %s992_s13, 5 }
  0x12   : > { %s925_s27 = sadd.s32 %s620_s26, %s994_s21 }
  0x13   : > { %s621_s28 = sshll.u32 %s925_s27, 2  ;;  %744 = vmatpush3.bf16.msra.mxu0 %v813_v2  ;;  %769 = vmatpush3.bf16.msra.mxu1 %v813_v2 }
  0x14   : > { %s198_s6 = scalar_lea.vmem %s977_s0, %s621_s28  ;;  %745 = vmatprep.subr.bf16.mxu0 %v814_v3  ;;  %766 = vmatprep.subr.bf16.mxu1 %v814_v3  ;;  %s952_s11 = scalar_lea.vmem %s980_s3, %s621_s28 }
  0x15   : > { %v815_v4 = vld [vmem:[%s198_s6] sm:$0xff]   ;;  %v817_v6 = vld [vmem:[%s198_s6 + $0x8] sm:$0xff]   ;;  %v819_v8 = vld [vmem:[%s198_s6 + $0x10] sm:$0xff]  }
  0x16   : > { %v816_v5 = vld [vmem:[%s198_s6 + $0x20] sm:$0xff]   ;;  %747 = vmatprep.mubr.msk.bf16.mxu0 %vm306_vm0, %v815_v4  ;;  %v818_v7 = vld [vmem:[%s198_s6 + $0x28] sm:$0xff]   ;;  %v820_v9 = vld [vmem:[%s198_s6 + $0x30] sm:$0xff]  }
  0x17   : > { %755 = vmatprep.mubr.msk.bf16.mxu1 %vm306_vm0, %v816_v5  ;;  %746 = vmatpush3.bf16.msra.mxu0 %v814_v3  ;;  %v821_v10 = vld [vmem:[%s198_s6 + $0x18] sm:$0xff]  }
  0x18   : > { %770 = vmatpush3.bf16.msra.mxu1 %v814_v3  ;;  %v822_v11 = vld [vmem:[%s198_s6 + $0x38] sm:$0xff]  }
  0x1a   : > { %748 = vmatmul.mubr.msk.bf16.vlgmr.msra.gmra.mrb[0].mxu0 %vm306_vm0, %v817_v6 }
  0x1b   : > { %756 = vmatmul.mubr.msk.bf16.vlgmr.msra.gmra.mrb[0].mxu1 %vm306_vm0, %v818_v7  ;;  %751 = vmatprep.mubr.msk.bf16.mxu0 %vm306_vm0, %v819_v8 }
  0x1c   : > { %759 = vmatprep.mubr.msk.bf16.mxu1 %vm306_vm0, %v820_v9 }
  0x22   : > { %752 = vmatmul.mubr.msk.bf16.gmra.mrb[4].mxu0 %vm306_vm0, %v821_v10 }
  0x23   : > { %760 = vmatmul.mubr.msk.bf16.gmra.mrb[4].mxu1 %vm306_vm0, %v822_v11 }
  0xed   : > { %v749_v13 = vpop.f32.mrb[0].mxu0 }
  0xee   : > { %v757_v14 = vpop.f32.mrb[0].mxu1  ;;  %v374_v15 = vadd.f32 %v749_v13, %v625_v12  ;;  %v365_v17 = vpop.f32.mrb[1].mxu0 }
  0xef   : > { %v406_v16 = vadd.f32 %v757_v14, %v625_v12  ;;  %v397_v18 = vpop.f32.mrb[1].mxu1  ;;  %v366_v19 = vadd.f32 %v625_v12, %v365_v17  ;;  %v750_v21 = vpop.f32.mrb[2].mxu0 }
  0xf0   : > { %v398_v20 = vadd.f32 %v625_v12, %v397_v18  ;;  %v758_v22 = vpop.f32.mrb[2].mxu1  ;;  %v377_v23 = vadd.f32 %v750_v21, %v625_v12  ;;  %v368_v25 = vpop.f32.mrb[3].mxu0  ;;  %v430_v29 = vmax.f32 %v374_v15, 0.0 }
  0xf1   : > { %v409_v24 = vadd.f32 %v758_v22, %v625_v12  ;;  %v400_v26 = vpop.f32.mrb[3].mxu1  ;;  %v369_v27 = vadd.f32 %v625_v12, %v368_v25  ;;  %v438_v30 = vmax.f32 %v406_v16, 0.0  ;;  %v428_v33 = vmax.f32 %v366_v19, 0.0 }
  0xf2   : > { %v401_v28 = vadd.f32 %v625_v12, %v400_v26  ;;  %v431_v31 = vmax.f32 %v377_v23, 0.0  ;;  %v436_v34 = vmax.f32 %v398_v20, 0.0 }
  0xf3   : > { %v439_v32 = vmax.f32 %v409_v24, 0.0  ;;  %v429_v35 = vmax.f32 %v369_v27, 0.0 }
  0xf4   : > { %v437_v36 = vmax.f32 %v401_v28, 0.0  ;;  %v688_v37 = vpack.c.bf16 %v431_v31, %v430_v29 }
  0xf5   : > { %v708_v38 = vpack.c.bf16 %v439_v32, %v438_v30  ;;  %v683_v39 = vpack.c.bf16 %v429_v35, %v428_v33  ;;  %v753_v41 = vpop.f32.mrb[4].mxu0 }
  0xf6   : > { %v703_v40 = vpack.c.bf16 %v437_v36, %v436_v34  ;;  %v761_v42 = vpop.f32.mrb[4].mxu1  ;;  %720 = vst [vmem:[%s952_s11 + $0x8] sm:$0xff] %v688_v37   ;;  %v390_v43 = vadd.f32 %v753_v41, %v625_v12  ;;  %v381_v45 = vpop.f32.mrb[5].mxu0 }
  0xf7   : > { %724 = vst [vmem:[%s952_s11 + $0x28] sm:$0xff] %v708_v38   ;;  %v422_v44 = vadd.f32 %v761_v42, %v625_v12  ;;  %v413_v46 = vpop.f32.mrb[5].mxu1  ;;  %684 = vst [vmem:[%s952_s11] sm:$0xff] %v683_v39   ;;  %v382_v47 = vadd.f32 %v625_v12, %v381_v45  ;;  %v754_v49 = vpop.f32.mrb[6].mxu0 }
  0xf8   : > { %723 = vst [vmem:[%s952_s11 + $0x20] sm:$0xff] %v703_v40   ;;  %v414_v48 = vadd.f32 %v625_v12, %v413_v46  ;;  %v762_v50 = vpop.f32.mrb[6].mxu1  ;;  %v393_v51 = vadd.f32 %v754_v49, %v625_v12  ;;  %v384_v53 = vpop.f32.mrb[7].mxu0  ;;  %v434_v57 = vmax.f32 %v390_v43, 0.0 }
  0xf9   : > { %v425_v52 = vadd.f32 %v762_v50, %v625_v12  ;;  %v416_v54 = vpop.f32.mrb[7].mxu1  ;;  %v385_v55 = vadd.f32 %v625_v12, %v384_v53  ;;  %v442_v58 = vmax.f32 %v422_v44, 0.0  ;;  %v432_v61 = vmax.f32 %v382_v47, 0.0 }
  0xfa   : > { %v417_v56 = vadd.f32 %v625_v12, %v416_v54  ;;  %v435_v59 = vmax.f32 %v393_v51, 0.0  ;;  %v440_v62 = vmax.f32 %v414_v48, 0.0 }
  0xfb   : > { %v443_v60 = vmax.f32 %v425_v52, 0.0  ;;  %v433_v63 = vmax.f32 %v385_v55, 0.0 }
  0xfc   : > { %v441_v0 = vmax.f32 %v417_v56, 0.0  ;;  %v698_v1 = vpack.c.bf16 %v435_v59, %v434_v57 }
  0xfd   : > { %v718_v2 = vpack.c.bf16 %v443_v60, %v442_v58  ;;  %v693_v3 = vpack.c.bf16 %v433_v63, %v432_v61 }
  0xfe   : > { %v713_v4 = vpack.c.bf16 %v441_v0, %v440_v62  ;;  %722 = vst [vmem:[%s952_s11 + $0x18] sm:$0xff] %v698_v1  }
  0xff   : > { %726 = vst [vmem:[%s952_s11 + $0x38] sm:$0xff] %v718_v2   ;;  %721 = vst [vmem:[%s952_s11 + $0x10] sm:$0xff] %v693_v3  }
 0x100   : > { %725 = vst [vmem:[%s952_s11 + $0x30] sm:$0xff] %v713_v4  }
 0x101 PF: > { %s13_s16 = sadd.s32 1, %s861_s16   ;;  %s981_s12 = smov %s853_s14 }
 0x102   : > { %p10_p7 = scmp.ge.s32.totalorder %s13_s16, 6   ;;  %s982_s13 = smov %s857_s15 }
 0x103   : > { %s983_s14 = smov %s986_s17  ;;  %s984_s15 = smov %s990_s18 }
 0x104   :  { %12 = sbr.rel (!%p10_p7) target bundleno = 3 (0x3), region = 62 }

// kernel: decoder_forward.11
= control target key start
LH: loop header
LB: loop body
LE: loop exit
PB: predicated region body
PF: predicated region fallthrough
CT: control target
= control target key end

     0   :  { %s2000_s12 = smov 0   ;;  %s2002_s13 = smov 0   ;;  %s2253_s0 = inlined_call_operand.vmem [shape: bf16[2,34,32,24], index: 0, kind: input, shape index: {}]   ;;  %s2254_s1 = inlined_call_operand.vmem [shape: bf16[3,24,128], index: 1, kind: input, shape index: {}]   ;;  %s2255_s2 = inlined_call_operand.vmem [shape: f32[1,128], index: 2, kind: input, shape index: {}]   ;;  %s2256_s3 = inlined_call_operand.vmem [shape: f32[2,1024,128], index: 3, kind: output, shape index: {}]  }
   0x1   :  { %s2004_s14 = smov 0   ;;  %s2006_s15 = smov 0  }
   0x2   :  { %s2008_s16 = smov 0  }
   0x3 LB: > { %s22_s17 = sadd.s32 1, %s1970_s14  ;;  %s25_s18 = sadd.s32 1, %s1974_s15  ;;  %s1978_s16 = sphi %s2008_s16, %s13_s16   ;;  %s1974_s15 = sphi %s2006_s15, %s2260_s15   ;;  %s1970_s14 = sphi %s2004_s14, %s2259_s14   ;;  %s1966_s13 = sphi %s2002_s13, %s2258_s13   ;;  %s1962_s12 = sphi %s2000_s12, %s2257_s12  }
   0x4   : > { %p23_p0 = scmp.ge.s32.totalorder %s22_s17, 4  ;;  %p1420_p1 = scmp.ge.s32.totalorder %s1978_s16, 1 }
   0x5   : > { %p151_p2 = scmp.lt.s32.totalorder %s1978_s16, 9 }
   0x6   : > { %s2262_s17 = smov (%p23_p0, %s22_s17), 0  ;;  %s2264_s18 = smov (!%p23_p0, %s25_s18), %s1974_s15 }
   0x7   : > { %p152_p3 = pnand %p1420_p1, %p151_p2  ;;  %p27_p4 = scmp.ge.s32.totalorder %s2264_s18, 2 }
   0x8   : > { %v1886_v0 = vld [vmem:[%s2254_s1 + $0xc] sm:$0xff] (!%p152_p3)   ;;  %vm412_vm0 = vcmask (!%p152_p3), 1043456   ;;  %v1887_v1 = vld [vmem:[%s2254_s1] sm:$0xff] (!%p152_p3)   ;;  %p179_p5 = scmp.lt.s32.totalorder (!%p152_p3), %s1966_s13, 1  ;;  %v1888_v2 = vld [vmem:[%s2254_s1 + $0x14] ss:$0 sps:$4 sm:$0xff] (!%p152_p3)  }
   0x9   : > { %s2266_s18 = smov (%p27_p4, %s2264_s18), 0  ;;  %155 = sbr.rel (%p152_p3) target bundleno = 331 (0x14b), region = 32 }
   0xa   : > { %1665 = vmatprep.subr.bf16.mxu1 (!%p152_p3), %v1886_v0  ;;  %1701 = vmatprep.subr.bf16.mxu0 (!%p152_p3), %v1887_v1  ;;  %v1889_v3 = vld [vmem:[%s2254_s1 + $0x8] ss:$0 sps:$4 sm:$0xff] (!%p152_p3)   ;;  %v414_v4 = vsel (!%p152_p3), %vm412_vm0, %v1888_v2, 0  ;;  %s1608_s28 = sshll.u32 (!%p152_p3), %s1962_s12, 7  ;;  %v1892_v6 = vld [vmem:[%s2254_s1 + $0x18] sm:$0xff] (!%p152_p3)   ;;  %vm363_vm1 = vcmask (!%p152_p3), 195584  }
   0xb   : > { %1666 = vmatpush3.bf16.msra.mxu1 (!%p152_p3), %v1886_v0  ;;  %1702 = vmatpush3.bf16.msra.mxu0 (!%p152_p3), %v1887_v1  ;;  %v715_v5 = vsel (!%p152_p3), %vm412_vm0, %v1889_v3, 0  ;;  %v1901_v9 = vld [vmem:[%s2254_s1 + $0x20] ss:$0 sps:$4 sm:$0xff] (!%p152_p3)   ;;  %s1422_s10 = sshll.u32 (!%p152_p3), %s1962_s12, 5 }
   0xc   : > { %1841 = vmatprep.subr.msk.bf16.mxu1 (!%p152_p3), %vm412_vm0, %v1888_v2  ;;  %1842 = vmatprep.subr.msk.bf16.mxu0 (!%p152_p3), %vm412_vm0, %v1889_v3  ;;  %v1056_v15 = vsel (!%p152_p3), %vm412_vm0, %v1901_v9, 0  ;;  %p187_p6 = scmp.lt.s32.totalorder (!%p152_p3), %s1422_s10, 127 }
   0xf   : > { %1668 = vmatpush3.bf16.msra.mxu1 (!%p152_p3), %v414_v4  ;;  %1704 = vmatpush3.bf16.msra.mxu0 (!%p152_p3), %v715_v5 }
  0x10   : > { %s2268_s13 = smov (!%p179_p5, %s1966_s13), 1  ;;  %1773 = vmatprep.subr.bf16.mxu1 %v1887_v1  ;;  %1737 = vmatprep.subr.bf16.mxu0 %v1892_v6  ;;  %s2270_s10 = smov (!%p187_p6, %s1422_s10), 127 }
  0x11   : > { %s1845_s27 = smul.u32 544, %s2268_s13  ;;  %s1423_s11 = sshll.u32 %s2268_s13, 7 }
  0x12   : > { %s190_s19 = sadd.s32 %s1423_s11, %s2270_s10 }
  0x13   : > { %s183_s6 = scalar_lea.vmem %s2253_s0, %s1845_s27  ;;  %s1424_s20 = sshll.u32 %s190_s19, 3 }
  0x14   : > { %s2058_s7 = scalar_lea.vmem %s183_s6, %s1608_s28  ;;  %s2172_s24 = scalar_lea.vmem %s2256_s3, %s1424_s20 }
  0x15   : > { %v1890_v7 = vld [vmem:[%s2058_s7 + $0x10] sm:$0xff]   ;;  %v1891_v8 = vld [vmem:[%s2058_s7] sm:$0xff]   ;;  %v1893_v10 = vld [vmem:[%s2058_s7 + $0x18] sm:$0xff]  }
  0x16   : > { %1669 = vmatprep.mubr.msk.bf16.mxu1 %vm363_vm1, %v1890_v7  ;;  %1705 = vmatprep.mubr.msk.bf16.mxu0 %vm363_vm1, %v1891_v8  ;;  %v1894_v11 = vld [vmem:[%s2058_s7 + $0x8] sm:$0xff]   ;;  %v1895_v12 = vld [vmem:[%s2058_s7 + $0x20] sm:$0xff]   ;;  %v1896_v13 = vld [vmem:[%s2058_s7 + $0x10] sm:$0xff]  }
  0x17   : > { %1670 = vmatmul.mubr.msk.bf16.vlgmr.msra.gmra.mrb[0].mxu1 %vm363_vm1, %v1893_v10  ;;  %1706 = vmatmul.mubr.msk.bf16.vlgmr.msra.gmra.mrb[0].mxu0 %vm363_vm1, %v1894_v11  ;;  %v1897_v14 = vld [vmem:[%s2058_s7 + $0x28] sm:$0xff]   ;;  %v1898_v16 = vld [vmem:[%s2058_s7 + $0x18] sm:$0xff]   ;;  %v1899_v17 = vld [vmem:[%s2058_s7 + $0x30] sm:$0xff]  }
  0x18   : > { %1775 = vmatpush3.bf16.msra.mxu1 %v1887_v1  ;;  %1738 = vmatpush3.bf16.msra.mxu0 %v1892_v6  ;;  %v1900_v18 = vld [vmem:[%s2058_s7 + $0x20] sm:$0xff]   ;;  %v1902_v19 = vld [vmem:[%s2058_s7 + $0x38] sm:$0xff]   ;;  %v1903_v20 = vld [vmem:[%s2058_s7 + $0x28] sm:$0xff]  }
  0x19   : > { %1673 = vmatprep.mubr.msk.bf16.mxu1 %vm363_vm1, %v1895_v12  ;;  %1709 = vmatprep.mubr.msk.bf16.mxu0 %vm363_vm1, %v1896_v13  ;;  %v1904_v21 = vld [vmem:[%s2058_s7 + $0x40] sm:$0xff]   ;;  %v1905_v22 = vld [vmem:[%s2058_s7 + $0x30] sm:$0xff]   ;;  %v1906_v23 = vld [vmem:[%s2058_s7 + $0x48] sm:$0xff]  }
  0x1a   : > { %1844 = vmatprep.subr.msk.bf16.mxu0 %vm412_vm0, %v1901_v9  ;;  %1843 = vmatprep.subr.msk.bf16.mxu1 %vm412_vm0, %v1889_v3  ;;  %v1907_v24 = vld [vmem:[%s2058_s7 + $0x38] sm:$0xff]   ;;  %v1908_v25 = vld [vmem:[%s2058_s7 + $0x50] sm:$0xff]   ;;  %v1909_v26 = vld [vmem:[%s2058_s7 + $0x20] sm:$0xff]  }
  0x1b   : > { %v1910_v27 = vld [vmem:[%s2058_s7 + $0x58] sm:$0xff]   ;;  %v1911_v28 = vld [vmem:[%s2058_s7 + $0x28] sm:$0xff]   ;;  %v1912_v29 = vld [vmem:[%s2058_s7 + $0x60] sm:$0xff]  }
  0x1c   : > { %1776 = vmatpush3.bf16.msra.mxu1 %v715_v5  ;;  %1740 = vmatpush3.bf16.msra.mxu0 %v1056_v15  ;;  %v1913_v30 = vld [vmem:[%s2058_s7 + $0x30] sm:$0xff]   ;;  %v1914_v31 = vld [vmem:[%s2058_s7 + $0x68] sm:$0xff]   ;;  %v1915_v32 = vld [vmem:[%s2058_s7 + $0x38] sm:$0xff]  }
  0x1d   : > { %v1916_v33 = vld [vmem:[%s2058_s7 + $0x70] sm:$0xff]   ;;  %v1917_v34 = vld [vmem:[%s2058_s7 + $0x40] sm:$0xff]   ;;  %v1918_v35 = vld [vmem:[%s2058_s7 + $0x78] sm:$0xff]  }
  0x1e   : > { %v1919_v36 = vld [vmem:[%s2058_s7 + $0x48] sm:$0xff]   ;;  %v1920_v37 = vld [vmem:[%s2058_s7 + $0x80] sm:$0xff]   ;;  %v1921_v38 = vld [vmem:[%s2058_s7 + $0x50] sm:$0xff]  }
  0x1f   : > { %1674 = vmatmul.mubr.msk.bf16.gmra.mrb[4].mxu1 %vm363_vm1, %v1897_v14  ;;  %1710 = vmatmul.mubr.msk.bf16.gmra.mrb[4].mxu0 %vm363_vm1, %v1898_v16  ;;  %v1922_v39 = vld [vmem:[%s2058_s7 + $0x88] sm:$0xff]   ;;  %v1923_v40 = vld [vmem:[%s2058_s7 + $0x58] sm:$0xff]   ;;  %v1924_v41 = vld [vmem:[%s2058_s7 + $0x40] sm:$0xff]  }
  0x20   : > { %1677 = vmatprep.mubr.msk.bf16.mxu1 %vm363_vm1, %v1899_v17  ;;  %1713 = vmatprep.mubr.msk.bf16.mxu0 %vm363_vm1, %v1900_v18  ;;  %v1925_v42 = vld [vmem:[%s2058_s7 + $0x60] sm:$0xff]   ;;  %v1926_v43 = vld [vmem:[%s2058_s7 + $0x48] sm:$0xff]   ;;  %v1928_v45 = vld [vmem:[%s2058_s7 + $0x50] sm:$0xff]  }
  0x21   : > { %v1927_v44 = vld [vmem:[%s2058_s7 + $0x68] sm:$0xff]   ;;  %v1929_v46 = vld [vmem:[%s2058_s7 + $0x70] sm:$0xff]   ;;  %v1930_v47 = vld [vmem:[%s2058_s7 + $0x58] sm:$0xff]  }
  0x22   : > { %v1931_v48 = vld [vmem:[%s2058_s7 + $0x78] sm:$0xff]   ;;  %v1932_v49 = vld [vmem:[%s2058_s7 + $0x60] sm:$0xff]   ;;  %v1934_v51 = vld [vmem:[%s2058_s7 + $0x68] sm:$0xff]  }
  0x23   : > { %v1933_v50 = vld [vmem:[%s2058_s7 + $0x80] sm:$0xff]   ;;  %v1935_v52 = vld [vmem:[%s2058_s7 + $0x88] sm:$0xff]   ;;  %v1936_v53 = vld [vmem:[%s2058_s7 + $0x70] sm:$0xff]  }
  0x24   : > { %v1937_v54 = vld [vmem:[%s2058_s7 + $0x90] sm:$0xff]   ;;  %v1938_v55 = vld [vmem:[%s2058_s7 + $0x78] sm:$0xff]   ;;  %v2167_v10 = vld [vmem:[%s2255_s2] ss:$0 sm:$0xff] }
  0x25   : > { %v1939_v56 = vld [vmem:[%s2058_s7 + $0x98] sm:$0xff]  }
  0x27   : > { %1678 = vmatmul.mubr.msk.bf16.gmra.mrb[8].mxu1 %vm363_vm1, %v1902_v19  ;;  %1714 = vmatmul.mubr.msk.bf16.gmra.mrb[8].mxu0 %vm363_vm1, %v1903_v20 }
  0x28   : > { %1681 = vmatprep.mubr.msk.bf16.mxu1 %vm363_vm1, %v1904_v21  ;;  %1717 = vmatprep.mubr.msk.bf16.mxu0 %vm363_vm1, %v1905_v22 }
  0x2f   : > { %1682 = vmatmul.mubr.msk.bf16.gmra.mrb[12].mxu1 %vm363_vm1, %v1906_v23  ;;  %1718 = vmatmul.mubr.msk.bf16.gmra.mrb[12].mxu0 %vm363_vm1, %v1907_v24 }
  0x30   : > { %1685 = vmatprep.mubr.msk.bf16.mxu1 %vm363_vm1, %v1908_v25  ;;  %1741 = vmatprep.mubr.msk.bf16.mxu0 %vm363_vm1, %v1909_v26 }
  0x37   : > { %1686 = vmatmul.mubr.msk.bf16.gmra.mrb[16].mxu1 %vm363_vm1, %v1910_v27  ;;  %1742 = vmatmul.mubr.msk.bf16.vlgmr.msra.gmra.mrb[0].mxu0 %vm363_vm1, %v1911_v28 }
  0x38   : > { %1689 = vmatprep.mubr.msk.bf16.mxu1 %vm363_vm1, %v1912_v29  ;;  %1745 = vmatprep.mubr.msk.bf16.mxu0 %vm363_vm1, %v1913_v30 }
  0x3f   : > { %1690 = vmatmul.mubr.msk.bf16.gmra.mrb[20].mxu1 %vm363_vm1, %v1914_v31  ;;  %1746 = vmatmul.mubr.msk.bf16.gmra.mrb[4].mxu0 %vm363_vm1, %v1915_v32 }
  0x40   : > { %1693 = vmatprep.mubr.msk.bf16.mxu1 %vm363_vm1, %v1916_v33  ;;  %1749 = vmatprep.mubr.msk.bf16.mxu0 %vm363_vm1, %v1917_v34 }
  0x47   : > { %1694 = vmatmul.mubr.msk.bf16.gmra.mrb[24].mxu1 %vm363_vm1, %v1918_v35  ;;  %1750 = vmatmul.mubr.msk.bf16.gmra.mrb[8].mxu0 %vm363_vm1, %v1919_v36 }
  0x48   : > { %1697 = vmatprep.mubr.msk.bf16.mxu1 %vm363_vm1, %v1920_v37  ;;  %1753 = vmatprep.mubr.msk.bf16.mxu0 %vm363_vm1, %v1921_v38 }
  0x4f   : > { %1698 = vmatmul.mubr.msk.bf16.gmra.mrb[28].mxu1 %vm363_vm1, %v1922_v39  ;;  %1754 = vmatmul.mubr.msk.bf16.gmra.mrb[12].mxu0 %vm363_vm1, %v1923_v40 }
  0x50   : > { %1721 = vmatprep.mubr.msk.bf16.mxu1 %vm363_vm1, %v1924_v41  ;;  %1757 = vmatprep.mubr.msk.bf16.mxu0 %vm363_vm1, %v1925_v42 }
  0x57   : > { %1722 = vmatmul.mubr.msk.bf16.vlgmr.msra.gmra.mrb[16].mxu1 %vm363_vm1, %v1926_v43  ;;  %1758 = vmatmul.mubr.msk.bf16.gmra.mrb[16].mxu0 %vm363_vm1, %v1927_v44 }
  0x58   : > { %1725 = vmatprep.mubr.msk.bf16.mxu1 %vm363_vm1, %v1928_v45  ;;  %1761 = vmatprep.mubr.msk.bf16.mxu0 %vm363_vm1, %v1929_v46 }
  0x5f   : > { %1726 = vmatmul.mubr.msk.bf16.gmra.mrb[20].mxu1 %vm363_vm1, %v1930_v47  ;;  %1762 = vmatmul.mubr.msk.bf16.gmra.mrb[20].mxu0 %vm363_vm1, %v1931_v48 }
  0x60   : > { %1729 = vmatprep.mubr.msk.bf16.mxu1 %vm363_vm1, %v1932_v49  ;;  %1765 = vmatprep.mubr.msk.bf16.mxu0 %vm363_vm1, %v1933_v50 }
  0x67   : > { %1730 = vmatmul.mubr.msk.bf16.gmra.mrb[24].mxu1 %vm363_vm1, %v1934_v51  ;;  %1766 = vmatmul.mubr.msk.bf16.gmra.mrb[24].mxu0 %vm363_vm1, %v1935_v52 }
  0x68   : > { %1733 = vmatprep.mubr.msk.bf16.mxu1 %vm363_vm1, %v1936_v53  ;;  %1769 = vmatprep.mubr.msk.bf16.mxu0 %vm363_vm1, %v1937_v54 }
  0x6f   : > { %1734 = vmatmul.mubr.msk.bf16.gmra.mrb[28].mxu1 %vm363_vm1, %v1938_v55  ;;  %1770 = vmatmul.mubr.msk.bf16.gmra.mrb[28].mxu0 %vm363_vm1, %v1939_v56 }
  0xea   : > { %v1671_v57 = vpop.f32.mrb[0].mxu1 }
  0xeb   : > { %v450_v58 = vpop.f32.mrb[1].mxu1 }
  0xec   : > { %v1672_v59 = vpop.f32.mrb[2].mxu1 }
  0xed   : > { %v453_v60 = vpop.f32.mrb[3].mxu1 }
  0xf2   : > { %v1675_v61 = vpop.f32.mrb[4].mxu1 }
  0xf3   : > { %v466_v62 = vpop.f32.mrb[5].mxu1 }
  0xf4   : > { %v1676_v63 = vpop.f32.mrb[6].mxu1 }
  0xf5   : > { %v469_v0 = vpop.f32.mrb[7].mxu1 }
  0xfa   : > { %v1679_v1 = vpop.f32.mrb[8].mxu1 }
  0xfb   : > { %v482_v2 = vpop.f32.mrb[9].mxu1 }
  0xfc   : > { %v1680_v3 = vpop.f32.mrb[10].mxu1 }
  0xfd   : > { %v485_v4 = vpop.f32.mrb[11].mxu1 }
 0x102   : > { %v1683_v5 = vpop.f32.mrb[12].mxu1 }
 0x103   : > { %v498_v6 = vpop.f32.mrb[13].mxu1 }
 0x104   : > { %v1684_v7 = vpop.f32.mrb[14].mxu1 }
 0x105   : > { %v501_v8 = vpop.f32.mrb[15].mxu1 }
 0x10a   : > { %v1743_v9 = vpop.f32.mrb[0].mxu0 }
 0x10b   : > { %v1777_v11 = vadd.f32 %v1743_v9, %v1671_v57  ;;  %v1092_v12 = vpop.f32.mrb[1].mxu0 }
 0x10c   : > { %v1778_v13 = vadd.f32 %v1092_v12, %v450_v58  ;;  %v1744_v14 = vpop.f32.mrb[2].mxu0 }
 0x10d   : > { %v1260_v15 = vadd.f32 %v1777_v11, %v2167_v10  ;;  %v1779_v16 = vadd.f32 %v1744_v14, %v1672_v59  ;;  %v1095_v17 = vpop.f32.mrb[3].mxu0 }
 0x10e   : > { %v1258_v18 = vadd.f32 %v1778_v13, %v2167_v10  ;;  %v1780_v19 = vadd.f32 %v1095_v17, %v453_v60 }
 0x10f   : > { %1292 = vst [vmem:[%s2172_s24 + $0x10] sm:$0xff] %v1260_v15  ;;  %v1261_v20 = vadd.f32 %v1779_v16, %v2167_v10 }
 0x110   : > { %1290 = vst [vmem:[%s2172_s24] sm:$0xff] %v1258_v18  ;;  %v1259_v21 = vadd.f32 %v1780_v19, %v2167_v10 }
 0x111   : > { %1293 = vst [vmem:[%s2172_s24 + $0x18] sm:$0xff] %v1261_v20 }
 0x112   : > { %1291 = vst [vmem:[%s2172_s24 + $0x8] sm:$0xff] %v1259_v21  ;;  %v1747_v22 = vpop.f32.mrb[4].mxu0 }
 0x113   : > { %v1781_v23 = vadd.f32 %v1747_v22, %v1675_v61  ;;  %v1108_v24 = vpop.f32.mrb[5].mxu0 }
 0x114   : > { %v1782_v25 = vadd.f32 %v1108_v24, %v466_v62  ;;  %v1748_v26 = vpop.f32.mrb[6].mxu0 }
 0x115   : > { %v1264_v27 = vadd.f32 %v1781_v23, %v2167_v10  ;;  %v1783_v28 = vadd.f32 %v1748_v26, %v1676_v63  ;;  %v1111_v29 = vpop.f32.mrb[7].mxu0 }
 0x116   : > { %v1262_v30 = vadd.f32 %v1782_v25, %v2167_v10  ;;  %v1784_v31 = vadd.f32 %v1111_v29, %v469_v0 }
 0x117   : > { %1296 = vst [vmem:[%s2172_s24 + $0x30] sm:$0xff] %v1264_v27  ;;  %v1265_v32 = vadd.f32 %v1783_v28, %v2167_v10 }
 0x118   : > { %1294 = vst [vmem:[%s2172_s24 + $0x20] sm:$0xff] %v1262_v30  ;;  %v1263_v33 = vadd.f32 %v1784_v31, %v2167_v10 }
 0x119   : > { %1297 = vst [vmem:[%s2172_s24 + $0x38] sm:$0xff] %v1265_v32 }
 0x11a   : > { %1295 = vst [vmem:[%s2172_s24 + $0x28] sm:$0xff] %v1263_v33  ;;  %v1751_v34 = vpop.f32.mrb[8].mxu0 }
 0x11b   : > { %v1785_v35 = vadd.f32 %v1751_v34, %v1679_v1  ;;  %v1124_v36 = vpop.f32.mrb[9].mxu0 }
 0x11c   : > { %v1786_v37 = vadd.f32 %v1124_v36, %v482_v2  ;;  %v1752_v38 = vpop.f32.mrb[10].mxu0 }
 0x11d   : > { %v1268_v39 = vadd.f32 %v1785_v35, %v2167_v10  ;;  %v1787_v40 = vadd.f32 %v1752_v38, %v1680_v3  ;;  %v1127_v41 = vpop.f32.mrb[11].mxu0 }
 0x11e   : > { %v1266_v42 = vadd.f32 %v1786_v37, %v2167_v10  ;;  %v1788_v43 = vadd.f32 %v1127_v41, %v485_v4 }
 0x11f   : > { %1300 = vst [vmem:[%s2172_s24 + $0x50] sm:$0xff] %v1268_v39  ;;  %v1269_v44 = vadd.f32 %v1787_v40, %v2167_v10 }
 0x120   : > { %1298 = vst [vmem:[%s2172_s24 + $0x40] sm:$0xff] %v1266_v42  ;;  %v1267_v45 = vadd.f32 %v1788_v43, %v2167_v10 }
 0x121   : > { %1301 = vst [vmem:[%s2172_s24 + $0x58] sm:$0xff] %v1269_v44 }
 0x122   : > { %1299 = vst [vmem:[%s2172_s24 + $0x48] sm:$0xff] %v1267_v45  ;;  %v1755_v46 = vpop.f32.mrb[12].mxu0 }
 0x123   : > { %v1789_v47 = vadd.f32 %v1755_v46, %v1683_v5  ;;  %v1140_v48 = vpop.f32.mrb[13].mxu0 }
 0x124   : > { %v1790_v49 = vadd.f32 %v1140_v48, %v498_v6  ;;  %v1756_v50 = vpop.f32.mrb[14].mxu0 }
 0x125   : > { %v1272_v51 = vadd.f32 %v1789_v47, %v2167_v10  ;;  %v1791_v52 = vadd.f32 %v1756_v50, %v1684_v7  ;;  %v1143_v53 = vpop.f32.mrb[15].mxu0 }
 0x126   : > { %v1270_v54 = vadd.f32 %v1790_v49, %v2167_v10  ;;  %v1792_v55 = vadd.f32 %v1143_v53, %v501_v8 }
 0x127   : > { %1304 = vst [vmem:[%s2172_s24 + $0x70] sm:$0xff] %v1272_v51  ;;  %v1273_v56 = vadd.f32 %v1791_v52, %v2167_v10 }
 0x128   : > { %1302 = vst [vmem:[%s2172_s24 + $0x60] sm:$0xff] %v1270_v54  ;;  %v1271_v57 = vadd.f32 %v1792_v55, %v2167_v10 }
 0x129   : > { %1305 = vst [vmem:[%s2172_s24 + $0x78] sm:$0xff] %v1273_v56 }
 0x12a   : > { %v1723_v58 = vpop.f32.mrb[16].mxu1  ;;  %1303 = vst [vmem:[%s2172_s24 + $0x68] sm:$0xff] %v1271_v57  ;;  %v1759_v59 = vpop.f32.mrb[16].mxu0 }
 0x12b   : > { %v815_v60 = vpop.f32.mrb[17].mxu1  ;;  %v1793_v61 = vadd.f32 %v1759_v59, %v1723_v58  ;;  %v1156_v62 = vpop.f32.mrb[17].mxu0 }
 0x12c   : > { %v1724_v63 = vpop.f32.mrb[18].mxu1  ;;  %v1794_v0 = vadd.f32 %v1156_v62, %v815_v60  ;;  %v1760_v1 = vpop.f32.mrb[18].mxu0 }
 0x12d   : > { %v818_v2 = vpop.f32.mrb[19].mxu1  ;;  %v1276_v3 = vadd.f32 %v1793_v61, %v2167_v10  ;;  %v1795_v4 = vadd.f32 %v1760_v1, %v1724_v63  ;;  %v1159_v5 = vpop.f32.mrb[19].mxu0 }
 0x12e   : > { %v1274_v6 = vadd.f32 %v1794_v0, %v2167_v10  ;;  %v1796_v7 = vadd.f32 %v1159_v5, %v818_v2 }
 0x12f   : > { %1308 = vst [vmem:[%s2172_s24 + $0x90] sm:$0xff] %v1276_v3  ;;  %v1277_v8 = vadd.f32 %v1795_v4, %v2167_v10 }
 0x130   : > { %1306 = vst [vmem:[%s2172_s24 + $0x80] sm:$0xff] %v1274_v6  ;;  %v1275_v9 = vadd.f32 %v1796_v7, %v2167_v10 }
 0x131   : > { %1309 = vst [vmem:[%s2172_s24 + $0x98] sm:$0xff] %v1277_v8 }
 0x132   : > { %v1727_v11 = vpop.f32.mrb[20].mxu1  ;;  %1307 = vst [vmem:[%s2172_s24 + $0x88] sm:$0xff] %v1275_v9  ;;  %v1763_v12 = vpop.f32.mrb[20].mxu0 }
 0x133   : > { %v831_v13 = vpop.f32.mrb[21].mxu1  ;;  %v1797_v14 = vadd.f32 %v1763_v12, %v1727_v11  ;;  %v1172_v15 = vpop.f32.mrb[21].mxu0 }
 0x134   : > { %v1728_v16 = vpop.f32.mrb[22].mxu1  ;;  %v1798_v17 = vadd.f32 %v1172_v15, %v831_v13  ;;  %v1764_v18 = vpop.f32.mrb[22].mxu0 }
 0x135   : > { %v834_v19 = vpop.f32.mrb[23].mxu1  ;;  %v1280_v20 = vadd.f32 %v1797_v14, %v2167_v10  ;;  %v1799_v21 = vadd.f32 %v1764_v18, %v1728_v16  ;;  %v1175_v22 = vpop.f32.mrb[23].mxu0 }
 0x136   : > { %v1278_v23 = vadd.f32 %v1798_v17, %v2167_v10  ;;  %v1800_v24 = vadd.f32 %v1175_v22, %v834_v19 }
 0x137   : > { %1312 = vst [vmem:[%s2172_s24 + $0xb0] sm:$0xff] %v1280_v20  ;;  %v1281_v25 = vadd.f32 %v1799_v21, %v2167_v10 }
 0x138   : > { %1310 = vst [vmem:[%s2172_s24 + $0xa0] sm:$0xff] %v1278_v23  ;;  %v1279_v26 = vadd.f32 %v1800_v24, %v2167_v10 }
 0x139   : > { %1313 = vst [vmem:[%s2172_s24 + $0xb8] sm:$0xff] %v1281_v25 }
 0x13a   : > { %v1731_v27 = vpop.f32.mrb[24].mxu1  ;;  %1311 = vst [vmem:[%s2172_s24 + $0xa8] sm:$0xff] %v1279_v26  ;;  %v1767_v28 = vpop.f32.mrb[24].mxu0 }
 0x13b   : > { %v847_v29 = vpop.f32.mrb[25].mxu1  ;;  %v1801_v30 = vadd.f32 %v1767_v28, %v1731_v27  ;;  %v1188_v31 = vpop.f32.mrb[25].mxu0 }
 0x13c   : > { %v1732_v32 = vpop.f32.mrb[26].mxu1  ;;  %v1802_v33 = vadd.f32 %v1188_v31, %v847_v29  ;;  %v1768_v34 = vpop.f32.mrb[26].mxu0 }
 0x13d   : > { %v850_v35 = vpop.f32.mrb[27].mxu1  ;;  %v1284_v36 = vadd.f32 %v1801_v30, %v2167_v10  ;;  %v1803_v37 = vadd.f32 %v1768_v34, %v1732_v32  ;;  %v1191_v38 = vpop.f32.mrb[27].mxu0 }
 0x13e   : > { %v1282_v39 = vadd.f32 %v1802_v33, %v2167_v10  ;;  %v1804_v40 = vadd.f32 %v1191_v38, %v850_v35 }
 0x13f   : > { %1316 = vst [vmem:[%s2172_s24 + $0xd0] sm:$0xff] %v1284_v36  ;;  %v1285_v41 = vadd.f32 %v1803_v37, %v2167_v10 }
 0x140   : > { %1314 = vst [vmem:[%s2172_s24 + $0xc0] sm:$0xff] %v1282_v39  ;;  %v1283_v42 = vadd.f32 %v1804_v40, %v2167_v10 }
 0x141   : > { %1317 = vst [vmem:[%s2172_s24 + $0xd8] sm:$0xff] %v1285_v41 }
 0x142   : > { %v1735_v43 = vpop.f32.mrb[28].mxu1  ;;  %1315 = vst [vmem:[%s2172_s24 + $0xc8] sm:$0xff] %v1283_v42  ;;  %v1771_v44 = vpop.f32.mrb[28].mxu0 }
 0x143   : > { %v863_v45 = vpop.f32.mrb[29].mxu1  ;;  %v1805_v46 = vadd.f32 %v1771_v44, %v1735_v43  ;;  %v1204_v47 = vpop.f32.mrb[29].mxu0 }
 0x144   : > { %v1736_v48 = vpop.f32.mrb[30].mxu1  ;;  %v1806_v49 = vadd.f32 %v1204_v47, %v863_v45  ;;  %v1772_v50 = vpop.f32.mrb[30].mxu0 }
 0x145   : > { %v866_v51 = vpop.f32.mrb[31].mxu1  ;;  %v1288_v52 = vadd.f32 %v1805_v46, %v2167_v10  ;;  %v1807_v53 = vadd.f32 %v1772_v50, %v1736_v48  ;;  %v1207_v54 = vpop.f32.mrb[31].mxu0 }
 0x146   : > { %v1286_v55 = vadd.f32 %v1806_v49, %v2167_v10  ;;  %v1808_v56 = vadd.f32 %v1207_v54, %v866_v51 }
 0x147   : > { %1320 = vst [vmem:[%s2172_s24 + $0xf0] sm:$0xff] %v1288_v52  ;;  %v1289_v57 = vadd.f32 %v1807_v53, %v2167_v10 }
 0x148   : > { %1318 = vst [vmem:[%s2172_s24 + $0xe0] sm:$0xff] %v1286_v55  ;;  %v1287_v58 = vadd.f32 %v1808_v56, %v2167_v10 }
 0x149   : > { %1321 = vst [vmem:[%s2172_s24 + $0xf8] sm:$0xff] %v1289_v57 }
 0x14a   : > { %1319 = vst [vmem:[%s2172_s24 + $0xe8] sm:$0xff] %v1287_v58 }
 0x14b PF: > { %s13_s16 = sadd.s32 1, %s1978_s16   ;;  %s2257_s12 = smov %s1970_s14 }
 0x14c   : > { %p10_p7 = scmp.ge.s32.totalorder %s13_s16, 10   ;;  %s2258_s13 = smov %s1974_s15 }
 0x14d   : > { %s2259_s14 = smov %s2262_s17  ;;  %s2260_s15 = smov %s2266_s18 }
 0x14e   :  { %12 = sbr.rel (!%p10_p7) target bundleno = 3 (0x3), region = 67 }

</bundles_post_ra>
